<compile_context>
chip_gen: v7x
topology: tpu7x:2x2x1
jax: 0.10.0
libtpu: 0.0.40
codegen_flags: <defaults>
</compile_context>

<pallas_src>
import numpy as np
import jax
import jax.numpy as jnp
from jax import lax
from jax.experimental import pallas as pl
from jax.experimental.pallas import tpu as pltpu


def _vmem_limit_bytes():
    """Generation-aware VMEM cap: ~3/4 of physical VMEM, floor 32 MiB."""
    try:
        cap = int(pltpu.get_tpu_info().vmem_capacity_bytes)
        return max(32 * 1024 * 1024, (cap * 3) // 4)
    except Exception:
        return 64 * 1024 * 1024


def _make_kernel(r2, nsample, N, TM, COp, normalize_inv):
    """COp = 3+C rounded up to 8; TM = 128 query tile; N = number of points."""
    dn = (((1,), (0,)), ((), ()))  # (3*COp, N) @ (N, TM) -> (3*COp, TM)

    def kernel(xyz_ref, newt_ref, src_ref, g_ref, idx_ref):
        xyz_b = xyz_ref[0]            # (N, 3)       f32  points (sublane major)
        newt = newt_ref[0]            # (3, TM)      f32  query centroids (lane major)
        src = src_ref[0]              # (3*COp, N)   bf16 stacked hi/mid/lo fused source

        # ---- ball query: squared distances in (N, TM) layout; same 3-term f32
        #      summation order as the reference so idx is bit-exact ----
        d2 = jnp.zeros((N, TM), jnp.float32)
        for c in range(3):
            diff = xyz_b[:, c:c + 1] - newt[c:c + 1, :]
            d2 = d2 + diff * diff

        iota_n = lax.broadcasted_iota(jnp.int32, (N, TM), 0)    # hoisted
        cand = jnp.where(d2 < r2, iota_n, N)                    # carried claim state

        # centering offset (and optional 1/r scale) for the first 8 rows (3 xyz + pad)
        off8 = jnp.concatenate([newt, jnp.zeros((8 - 3, TM), jnp.float32)], axis=0)
        if normalize_inv is not None:
            row8 = lax.broadcasted_iota(jnp.int32, (8, TM), 0)
            scale8 = jnp.where(row8 < 3, jnp.float32(normalize_inv), jnp.float32(1.0))
        else:
            scale8 = None

        first = None
        idx_rows = []
        # TODO(synk): for nsample >= ~16 switch this unrolled loop to lax.fori_loop
        # (dynamic g_ref/idx_ref row stores) to bound live ranges.
        for s in range(nsample):
            raw = jnp.min(cand, axis=0, keepdims=True)          # (1, TM) lane-dense
            found = raw < N
            if s == 0:
                idx_s = jnp.where(found, raw, 0)                # empty ball -> 0
                first = idx_s
            else:
                idx_s = jnp.where(found, raw, first)            # pad with first index
            cand = jnp.where(cand == raw, N, cand)              # claim (no-op if empty)
            idx_rows.append(idx_s)

            # ---- grouping: ONE MXU gather per slot; exact f32 via 3 bf16 terms ----
            oh = jnp.where(iota_n == idx_s, 1.0, 0.0).astype(jnp.bfloat16)   # (N, TM)
            g = lax.dot_general(src, oh, dn, preferred_element_type=jnp.float32)
            g_sum = g[0:COp] + g[COp:2 * COp] + g[2 * COp:3 * COp]           # (COp, TM)

            g_first = g_sum[0:8, :] - off8                      # xyz rows centered
            if scale8 is not None:
                g_first = g_first * scale8                      # exact: features * 1.0
            if COp == 8:
                g_ref[0, s] = g_first
            else:
                g_ref[0, s, 0:8, :] = g_first
                g_ref[0, s, 8:, :] = g_sum[8:, :]

        idx_ref[0] = jnp.concatenate(idx_rows, axis=0)          # (nsample, TM)

    return kernel


class QueryAndGroup:
    """JAX/Pallas port of pointnet2 QueryAndGroup (forward only)."""

    def __init__(self, radius, nsample, use_xyz=True, return_idx=False,
                 normalize_xyz=False):
        self.radius = float(radius)
        self.nsample = int(nsample)
        self.use_xyz = use_xyz
        self.return_idx = return_idx
        self.normalize_xyz = normalize_xyz

    def __call__(self, xyz, new_xyz, features=None):
        B, N, _ = xyz.shape
        M = int(new_xyz.shape[1])
        has_features = features is not None
        if not has_features:
            assert self.use_xyz, "Cannot have not features and not use xyz as a feature!"
        C = int(features.shape[1]) if has_features else 0
        ns = self.nsample
        CO = 3 + C
        COp = max(8, ((CO + 7) // 8) * 8)        # sublane-aligned fused-channel count

        xyz = xyz.astype(jnp.float32)
        new_xyz = new_xyz.astype(jnp.float32)

        # --- query tiling: TM = 128 always; pad Mp to a multiple of 128 so all stores
        #     are lane-dense (padded queries are sliced off afterwards) ---
        TM = 128
        Mp = ((M + TM - 1) // TM) * TM
        new_xyz_p = new_xyz if Mp == M else jnp.pad(
            new_xyz, ((0, 0), (0, Mp - M), (0, 0)))
        newt_all = jnp.transpose(new_xyz_p, (0, 2, 1))           # (B, 3, Mp)

        # --- fused gather source (xyz ++ features), zero-padded to COp rows ---
        src = jnp.transpose(xyz, (0, 2, 1))                      # (B, 3, N)
        if has_features:
            src = jnp.concatenate([src, features.astype(jnp.float32)], axis=1)
        if COp > CO:
            src = jnp.pad(src, ((0, 0), (0, COp - CO), (0, 0)))

        # 3-term bf16 split (s1+s2+s3 reconstructs the f32 source exactly for
        # normal-range values), stacked into ONE operand -> one matmul per slot.
        # TODO(synk): skip the hi/mid/lo split for feature rows when features are bf16.
        s1 = src.astype(jnp.bfloat16)
        r1 = src - s1.astype(jnp.float32)
        s2 = r1.astype(jnp.bfloat16)
        s3 = (r1 - s2.astype(jnp.float32)).astype(jnp.bfloat16)
        src_stack = jnp.concatenate([s1, s2, s3], axis=1)        # (B, 3*COp, N) bf16

        inv = (1.0 / self.radius) if self.normalize_xyz else None
        kernel = _make_kernel(self.radius * self.radius, ns, N, TM, COp, inv)

        grid = (B, Mp // TM)
        # TODO(synk): tile N (inner "arbitrary" grid axis with carried claim state) for
        # very large N; whole-N blocks are the first thing to blow v7x's 64 MiB VMEM.
        in_specs = [
            pl.BlockSpec((1, N, 3), lambda b, i: (b, 0, 0)),         # points
            pl.BlockSpec((1, 3, TM), lambda b, i: (b, 0, i)),        # centroid tile
            pl.BlockSpec((1, 3 * COp, N), lambda b, i: (b, 0, 0)),   # stacked source
        ]
        out_shape = (
            jax.ShapeDtypeStruct((B, ns, COp, Mp), jnp.float32),     # grouped, lane-dense
            jax.ShapeDtypeStruct((B, ns, Mp), jnp.int32),            # ball-query idx
        )
        out_specs = (
            pl.BlockSpec((1, ns, COp, TM), lambda b, i: (b, 0, 0, i)),
            pl.BlockSpec((1, ns, TM), lambda b, i: (b, 0, i)),
        )

        grouped, idx = pl.pallas_call(
            kernel,
            grid=grid,
            in_specs=in_specs,
            out_specs=out_specs,
            out_shape=out_shape,
            compiler_params=pltpu.CompilerParams(
                dimension_semantics=("parallel", "parallel"),
                vmem_limit_bytes=_vmem_limit_bytes()),
        )(xyz, newt_all, src_stack)

        # (B, ns, COp, Mp) -> (B, 3+C, npoint, nsample)  (PyTorch layout)
        grouped = jnp.transpose(grouped, (0, 2, 3, 1))[:, :CO, :M, :]
        idx = jnp.transpose(idx, (0, 2, 1))[:, :M, :]

        if has_features and not self.use_xyz:
            new_features = grouped[:, 3:, :, :]
        else:
            new_features = grouped
        if self.return_idx:
            return new_features, idx
        return new_features


def _reference(xyz, new_xyz, features, radius, nsample, use_xyz, normalize_xyz):
    """NumPy re-implementation of the original CUDA ball_query + grouping."""
    xyz = np.asarray(xyz, np.float32)
    new_xyz = np.asarray(new_xyz, np.float32)
    B, N, _ = xyz.shape
    M = new_xyz.shape[1]
    r2 = radius * radius
    idx = np.zeros((B, M, nsample), np.int32)
    for b in range(B):
        for m in range(M):
            cnt = 0
            for k in range(N):
                d = xyz[b, k] - new_xyz[b, m]
                d2 = np.float32(np.sum(d * d, dtype=np.float32))
                if d2 < r2:
                    if cnt == 0:
                        idx[b, m, :] = k
                    idx[b, m, cnt] = k
                    cnt += 1
                    if cnt >= nsample:
                        break
    g_xyz = np.zeros((B, 3, M, nsample), np.float32)
    for b in range(B):
        for m in range(M):
            for s in range(nsample):
                g_xyz[b, :, m, s] = xyz[b, idx[b, m, s]] - new_xyz[b, m]
    if normalize_xyz:
        g_xyz = g_xyz / radius
    parts = []
    if use_xyz:
        parts.append(g_xyz)
    if features is not None:
        feats = np.asarray(features, np.float32)
        C = feats.shape[1]
        g_feat = np.zeros((B, C, M, nsample), np.float32)
        for b in range(B):
            for m in range(M):
                for s in range(nsample):
                    g_feat[b, :, m, s] = feats[b, :, idx[b, m, s]]
        parts.append(g_feat)
    return np.concatenate(parts, axis=1), idx


if __name__ == "__main__":
    B, N, M, C, nsample = 2, 32, 8, 4, 8
    radius = 0.5

    key = jax.random.PRNGKey(0)
    k1, k2 = jax.random.split(key)
    xyz = jax.random.uniform(k1, (B, N, 3), dtype=jnp.float32)       # points in [0,1)^3
    new_xyz = xyz[:, :M, :]                                          # centroids (subset)
    features = jax.random.normal(k2, (B, C, N), dtype=jnp.float32)   # (B, C, N)

    # config 1: xyz + features, return idx
    qag = QueryAndGroup(radius, nsample, use_xyz=True, return_idx=True,
                        normalize_xyz=False)
    new_features, idx = qag(xyz, new_xyz, features)
    new_features = jax.block_until_ready(new_features)
    idx = jax.block_until_ready(idx)

    assert new_features.shape == (B, 3 + C, M, nsample)
    assert new_features.dtype == jnp.float32
    assert idx.shape == (B, M, nsample) and idx.dtype == jnp.int32

    ref_feats, ref_idx = _reference(xyz, new_xyz, features, radius, nsample,
                                    use_xyz=True, normalize_xyz=False)
    assert np.array_equal(np.asarray(idx), ref_idx), "ball_query idx mismatch"
    assert np.allclose(np.asarray(new_features), ref_feats, atol=1e-5), "feature mismatch"

    # config 2: xyz only, normalized (exercises the C=0 and normalize_xyz paths)
    qag2 = QueryAndGroup(radius, nsample, use_xyz=True, return_idx=False,
                         normalize_xyz=True)
    out2 = jax.block_until_ready(qag2(xyz, new_xyz))
    ref2, _ = _reference(xyz, new_xyz, None, radius, nsample,
                         use_xyz=True, normalize_xyz=True)
    assert out2.shape == (B, 3, M, nsample)
    assert np.allclose(np.asarray(out2), ref2, atol=1e-5), "xyz-only mismatch"

    print("KERNEL_OK")
</pallas_src>

<mosaic_0001>
module attributes {stable_mosaic.version = 11 : i64} {
  func.func @kernel(%arg0: i32, %arg1: i32, %arg2: memref<1x32x3xf32, #tpu.memory_space<vmem>>, %arg3: memref<1x3x128xf32, #tpu.memory_space<vmem>>, %arg4: memref<1x24x32xbf16, #tpu.memory_space<vmem>>, %arg5: memref<1x8x8x128xf32, #tpu.memory_space<vmem>>, %arg6: memref<1x8x128xi32, #tpu.memory_space<vmem>>) attributes {dimension_semantics = [#tpu.dimension_semantics<parallel>, #tpu.dimension_semantics<parallel>], iteration_bounds = array<i64: 2, 1>, scalar_prefetch = 0 : i64, scratch_operands = 0 : i64, tpu.core_type = #tpu.core_type<tc>, window_params = [{transform_indices = @transform_0, window_bounds = array<i64: 1, 32, 3>}, {transform_indices = @transform_1, window_bounds = array<i64: 1, 3, 128>}, {transform_indices = @transform_2, window_bounds = array<i64: 1, 24, 32>}, {transform_indices = @transform_3, window_bounds = array<i64: 1, 8, 8, 128>}, {transform_indices = @transform_4, window_bounds = array<i64: 1, 8, 128>}]} {
    %c0 = arith.constant 0 : index
    %c0_0 = arith.constant 0 : index
    %c0_1 = arith.constant 0 : index
    %0 = vector.load %arg2[%c0, %c0_0, %c0_1] : memref<1x32x3xf32, #tpu.memory_space<vmem>>, vector<1x32x3xf32>
    %1 = vector.shape_cast %0 : vector<1x32x3xf32> to vector<32x3xf32>
    %c0_2 = arith.constant 0 : index
    %c0_3 = arith.constant 0 : index
    %c0_4 = arith.constant 0 : index
    %2 = vector.load %arg3[%c0_2, %c0_3, %c0_4] : memref<1x3x128xf32, #tpu.memory_space<vmem>>, vector<1x3x128xf32>
    %3 = vector.shape_cast %2 : vector<1x3x128xf32> to vector<3x128xf32>
    %c0_5 = arith.constant 0 : index
    %c0_6 = arith.constant 0 : index
    %c0_7 = arith.constant 0 : index
    %4 = vector.load %arg4[%c0_5, %c0_6, %c0_7] : memref<1x24x32xbf16, #tpu.memory_space<vmem>>, vector<1x24x32xbf16>
    %5 = vector.shape_cast %4 : vector<1x24x32xbf16> to vector<24x32xbf16>
    %cst = arith.constant 0.000000e+00 : f32
    %6 = vector.broadcast %cst : f32 to vector<32x128xf32>
    %7 = vector.extract_strided_slice %1 {offsets = [0, 0], sizes = [32, 1], strides = [1, 1]} : vector<32x3xf32> to vector<32x1xf32>
    %8 = vector.extract_strided_slice %3 {offsets = [0, 0], sizes = [1, 128], strides = [1, 1]} : vector<3x128xf32> to vector<1x128xf32>
    %9 = vector.broadcast %7 : vector<32x1xf32> to vector<32x128xf32>
    %10 = vector.broadcast %8 : vector<1x128xf32> to vector<32x128xf32>
    %11 = arith.subf %9, %10 : vector<32x128xf32>
    %12 = arith.mulf %11, %11 : vector<32x128xf32>
    %13 = arith.addf %6, %12 : vector<32x128xf32>
    %14 = vector.extract_strided_slice %1 {offsets = [0, 1], sizes = [32, 1], strides = [1, 1]} : vector<32x3xf32> to vector<32x1xf32>
    %15 = vector.extract_strided_slice %3 {offsets = [1, 0], sizes = [1, 128], strides = [1, 1]} : vector<3x128xf32> to vector<1x128xf32>
    %16 = vector.broadcast %14 : vector<32x1xf32> to vector<32x128xf32>
    %17 = vector.broadcast %15 : vector<1x128xf32> to vector<32x128xf32>
    %18 = arith.subf %16, %17 : vector<32x128xf32>
    %19 = arith.mulf %18, %18 : vector<32x128xf32>
    %20 = arith.addf %13, %19 : vector<32x128xf32>
    %21 = vector.extract_strided_slice %1 {offsets = [0, 2], sizes = [32, 1], strides = [1, 1]} : vector<32x3xf32> to vector<32x1xf32>
    %22 = vector.extract_strided_slice %3 {offsets = [2, 0], sizes = [1, 128], strides = [1, 1]} : vector<3x128xf32> to vector<1x128xf32>
    %23 = vector.broadcast %21 : vector<32x1xf32> to vector<32x128xf32>
    %24 = vector.broadcast %22 : vector<1x128xf32> to vector<32x128xf32>
    %25 = arith.subf %23, %24 : vector<32x128xf32>
    %26 = arith.mulf %25, %25 : vector<32x128xf32>
    %27 = arith.addf %20, %26 : vector<32x128xf32>
    %28 = tpu.iota {dimensions = array<i32: 0>} : vector<32x128xi32>
    %cst_8 = arith.constant 2.500000e-01 : f32
    %29 = vector.broadcast %cst_8 : f32 to vector<32x128xf32>
    %30 = arith.cmpf olt, %27, %29 : vector<32x128xf32>
    %c32_i32 = arith.constant 32 : i32
    %31 = vector.broadcast %c32_i32 : i32 to vector<32x128xi32>
    %32 = arith.select %30, %28, %31 : vector<32x128xi1>, vector<32x128xi32>
    %cst_9 = arith.constant 0.000000e+00 : f32
    %33 = vector.broadcast %cst_9 : f32 to vector<5x128xf32>
    %34 = tpu.concatenate %3, %33 in 0 : vector<3x128xf32>, vector<5x128xf32> -> vector<8x128xf32>
    %cst_10 = arith.constant dense<2147483647> : vector<128xi32>
    %35 = vector.multi_reduction <minsi>, %32, %cst_10 [0] : vector<32x128xi32> to vector<128xi32>
    %36 = vector.shape_cast %35 : vector<128xi32> to vector<1x128xi32>
    %c32_i32_11 = arith.constant 32 : i32
    %37 = vector.broadcast %c32_i32_11 : i32 to vector<1x128xi32>
    %38 = arith.cmpi slt, %36, %37 : vector<1x128xi32>
    %c0_i32 = arith.constant 0 : i32
    %39 = vector.broadcast %c0_i32 : i32 to vector<1x128xi32>
    %40 = arith.select %38, %36, %39 : vector<1x128xi1>, vector<1x128xi32>
    %41 = vector.broadcast %36 : vector<1x128xi32> to vector<32x128xi32>
    %42 = arith.cmpi eq, %32, %41 : vector<32x128xi32>
    %c32_i32_12 = arith.constant 32 : i32
    %43 = vector.broadcast %c32_i32_12 : i32 to vector<32x128xi32>
    %44 = arith.select %42, %43, %32 : vector<32x128xi1>, vector<32x128xi32>
    %45 = vector.broadcast %40 : vector<1x128xi32> to vector<32x128xi32>
    %46 = arith.cmpi eq, %28, %45 : vector<32x128xi32>
    %cst_13 = arith.constant 1.000000e+00 : f32
    %cst_14 = arith.constant 0.000000e+00 : f32
    %47 = vector.broadcast %cst_13 : f32 to vector<32x128xf32>
    %48 = vector.broadcast %cst_14 : f32 to vector<32x128xf32>
    %49 = arith.select %46, %47, %48 : vector<32x128xi1>, vector<32x128xf32>
    %50 = arith.truncf %49 : vector<32x128xf32> to vector<32x128xbf16>
    %cst_15 = arith.constant dense<0.000000e+00> : vector<24x128xf32>
    %51 = tpu.matmul %5, %50, %cst_15 {dimension_numbers = #tpu.dot_dimension_numbers<[1], [0], [0], [1], [0, 0, 1, 1], [], []>} : vector<24x32xbf16>, vector<32x128xbf16>, vector<24x128xf32> -> vector<24x128xf32>
    %52 = vector.extract_strided_slice %51 {offsets = [0, 0], sizes = [8, 128], strides = [1, 1]} : vector<24x128xf32> to vector<8x128xf32>
    %53 = vector.extract_strided_slice %51 {offsets = [8, 0], sizes = [8, 128], strides = [1, 1]} : vector<24x128xf32> to vector<8x128xf32>
    %54 = arith.addf %52, %53 : vector<8x128xf32>
    %55 = vector.extract_strided_slice %51 {offsets = [16, 0], sizes = [8, 128], strides = [1, 1]} : vector<24x128xf32> to vector<8x128xf32>
    %56 = arith.addf %54, %55 : vector<8x128xf32>
    %57 = arith.subf %56, %34 : vector<8x128xf32>
    %c0_16 = arith.constant 0 : index
    %c0_17 = arith.constant 0 : index
    %c0_18 = arith.constant 0 : index
    %c0_19 = arith.constant 0 : index
    %58 = vector.load %arg5[%c0_16, %c0_17, %c0_18, %c0_19] : memref<1x8x8x128xf32, #tpu.memory_space<vmem>>, vector<1x1x8x128xf32>
    %59 = vector.shape_cast %58 : vector<1x1x8x128xf32> to vector<8x128xf32>
    %60 = vector.shape_cast %57 : vector<8x128xf32> to vector<1x1x8x128xf32>
    tpu.vector_store %arg5[%c0_16, %c0_17, %c0_18, %c0_19], %60 {strides = array<i32>} : memref<1x8x8x128xf32, #tpu.memory_space<vmem>>, vector<1x1x8x128xf32>,
    %cst_20 = arith.constant dense<2147483647> : vector<128xi32>
    %61 = vector.multi_reduction <minsi>, %44, %cst_20 [0] : vector<32x128xi32> to vector<128xi32>
    %62 = vector.shape_cast %61 : vector<128xi32> to vector<1x128xi32>
    %c32_i32_21 = arith.constant 32 : i32
    %63 = vector.broadcast %c32_i32_21 : i32 to vector<1x128xi32>
    %64 = arith.cmpi slt, %62, %63 : vector<1x128xi32>
    %65 = arith.select %64, %62, %40 : vector<1x128xi1>, vector<1x128xi32>
    %66 = vector.broadcast %62 : vector<1x128xi32> to vector<32x128xi32>
    %67 = arith.cmpi eq, %44, %66 : vector<32x128xi32>
    %c32_i32_22 = arith.constant 32 : i32
    %68 = vector.broadcast %c32_i32_22 : i32 to vector<32x128xi32>
    %69 = arith.select %67, %68, %44 : vector<32x128xi1>, vector<32x128xi32>
    %70 = vector.broadcast %65 : vector<1x128xi32> to vector<32x128xi32>
    %71 = arith.cmpi eq, %28, %70 : vector<32x128xi32>
    %cst_23 = arith.constant 1.000000e+00 : f32
    %cst_24 = arith.constant 0.000000e+00 : f32
    %72 = vector.broadcast %cst_23 : f32 to vector<32x128xf32>
    %73 = vector.broadcast %cst_24 : f32 to vector<32x128xf32>
    %74 = arith.select %71, %72, %73 : vector<32x128xi1>, vector<32x128xf32>
    %75 = arith.truncf %74 : vector<32x128xf32> to vector<32x128xbf16>
    %cst_25 = arith.constant dense<0.000000e+00> : vector<24x128xf32>
    %76 = tpu.matmul %5, %75, %cst_25 {dimension_numbers = #tpu.dot_dimension_numbers<[1], [0], [0], [1], [0, 0, 1, 1], [], []>} : vector<24x32xbf16>, vector<32x128xbf16>, vector<24x128xf32> -> vector<24x128xf32>
    %77 = vector.extract_strided_slice %76 {offsets = [0, 0], sizes = [8, 128], strides = [1, 1]} : vector<24x128xf32> to vector<8x128xf32>
    %78 = vector.extract_strided_slice %76 {offsets = [8, 0], sizes = [8, 128], strides = [1, 1]} : vector<24x128xf32> to vector<8x128xf32>
    %79 = arith.addf %77, %78 : vector<8x128xf32>
    %80 = vector.extract_strided_slice %76 {offsets = [16, 0], sizes = [8, 128], strides = [1, 1]} : vector<24x128xf32> to vector<8x128xf32>
    %81 = arith.addf %79, %80 : vector<8x128xf32>
    %82 = arith.subf %81, %34 : vector<8x128xf32>
    %c0_26 = arith.constant 0 : index
    %c1 = arith.constant 1 : index
    %c0_27 = arith.constant 0 : index
    %c0_28 = arith.constant 0 : index
    %83 = vector.load %arg5[%c0_26, %c1, %c0_27, %c0_28] : memref<1x8x8x128xf32, #tpu.memory_space<vmem>>, vector<1x1x8x128xf32>
    %84 = vector.shape_cast %83 : vector<1x1x8x128xf32> to vector<8x128xf32>
    %85 = vector.shape_cast %82 : vector<8x128xf32> to vector<1x1x8x128xf32>
    tpu.vector_store %arg5[%c0_26, %c1, %c0_27, %c0_28], %85 {strides = array<i32>} : memref<1x8x8x128xf32, #tpu.memory_space<vmem>>, vector<1x1x8x128xf32>,
    %cst_29 = arith.constant dense<2147483647> : vector<128xi32>
    %86 = vector.multi_reduction <minsi>, %69, %cst_29 [0] : vector<32x128xi32> to vector<128xi32>
    %87 = vector.shape_cast %86 : vector<128xi32> to vector<1x128xi32>
    %c32_i32_30 = arith.constant 32 : i32
    %88 = vector.broadcast %c32_i32_30 : i32 to vector<1x128xi32>
    %89 = arith.cmpi slt, %87, %88 : vector<1x128xi32>
    %90 = arith.select %89, %87, %40 : vector<1x128xi1>, vector<1x128xi32>
    %91 = vector.broadcast %87 : vector<1x128xi32> to vector<32x128xi32>
    %92 = arith.cmpi eq, %69, %91 : vector<32x128xi32>
    %c32_i32_31 = arith.constant 32 : i32
    %93 = vector.broadcast %c32_i32_31 : i32 to vector<32x128xi32>
    %94 = arith.select %92, %93, %69 : vector<32x128xi1>, vector<32x128xi32>
    %95 = vector.broadcast %90 : vector<1x128xi32> to vector<32x128xi32>
    %96 = arith.cmpi eq, %28, %95 : vector<32x128xi32>
    %cst_32 = arith.constant 1.000000e+00 : f32
    %cst_33 = arith.constant 0.000000e+00 : f32
    %97 = vector.broadcast %cst_32 : f32 to vector<32x128xf32>
    %98 = vector.broadcast %cst_33 : f32 to vector<32x128xf32>
    %99 = arith.select %96, %97, %98 : vector<32x128xi1>, vector<32x128xf32>
    %100 = arith.truncf %99 : vector<32x128xf32> to vector<32x128xbf16>
    %cst_34 = arith.constant dense<0.000000e+00> : vector<24x128xf32>
    %101 = tpu.matmul %5, %100, %cst_34 {dimension_numbers = #tpu.dot_dimension_numbers<[1], [0], [0], [1], [0, 0, 1, 1], [], []>} : vector<24x32xbf16>, vector<32x128xbf16>, vector<24x128xf32> -> vector<24x128xf32>
    %102 = vector.extract_strided_slice %101 {offsets = [0, 0], sizes = [8, 128], strides = [1, 1]} : vector<24x128xf32> to vector<8x128xf32>
    %103 = vector.extract_strided_slice %101 {offsets = [8, 0], sizes = [8, 128], strides = [1, 1]} : vector<24x128xf32> to vector<8x128xf32>
    %104 = arith.addf %102, %103 : vector<8x128xf32>
    %105 = vector.extract_strided_slice %101 {offsets = [16, 0], sizes = [8, 128], strides = [1, 1]} : vector<24x128xf32> to vector<8x128xf32>
    %106 = arith.addf %104, %105 : vector<8x128xf32>
    %107 = arith.subf %106, %34 : vector<8x128xf32>
    %c0_35 = arith.constant 0 : index
    %c2 = arith.constant 2 : index
    %c0_36 = arith.constant 0 : index
    %c0_37 = arith.constant 0 : index
    %108 = vector.load %arg5[%c0_35, %c2, %c0_36, %c0_37] : memref<1x8x8x128xf32, #tpu.memory_space<vmem>>, vector<1x1x8x128xf32>
    %109 = vector.shape_cast %108 : vector<1x1x8x128xf32> to vector<8x128xf32>
    %110 = vector.shape_cast %107 : vector<8x128xf32> to vector<1x1x8x128xf32>
    tpu.vector_store %arg5[%c0_35, %c2, %c0_36, %c0_37], %110 {strides = array<i32>} : memref<1x8x8x128xf32, #tpu.memory_space<vmem>>, vector<1x1x8x128xf32>,
    %cst_38 = arith.constant dense<2147483647> : vector<128xi32>
    %111 = vector.multi_reduction <minsi>, %94, %cst_38 [0] : vector<32x128xi32> to vector<128xi32>
    %112 = vector.shape_cast %111 : vector<128xi32> to vector<1x128xi32>
    %c32_i32_39 = arith.constant 32 : i32
    %113 = vector.broadcast %c32_i32_39 : i32 to vector<1x128xi32>
    %114 = arith.cmpi slt, %112, %113 : vector<1x128xi32>
    %115 = arith.select %114, %112, %40 : vector<1x128xi1>, vector<1x128xi32>
    %116 = vector.broadcast %112 : vector<1x128xi32> to vector<32x128xi32>
    %117 = arith.cmpi eq, %94, %116 : vector<32x128xi32>
    %c32_i32_40 = arith.constant 32 : i32
    %118 = vector.broadcast %c32_i32_40 : i32 to vector<32x128xi32>
    %119 = arith.select %117, %118, %94 : vector<32x128xi1>, vector<32x128xi32>
    %120 = vector.broadcast %115 : vector<1x128xi32> to vector<32x128xi32>
    %121 = arith.cmpi eq, %28, %120 : vector<32x128xi32>
    %cst_41 = arith.constant 1.000000e+00 : f32
    %cst_42 = arith.constant 0.000000e+00 : f32
    %122 = vector.broadcast %cst_41 : f32 to vector<32x128xf32>
    %123 = vector.broadcast %cst_42 : f32 to vector<32x128xf32>
    %124 = arith.select %121, %122, %123 : vector<32x128xi1>, vector<32x128xf32>
    %125 = arith.truncf %124 : vector<32x128xf32> to vector<32x128xbf16>
    %cst_43 = arith.constant dense<0.000000e+00> : vector<24x128xf32>
    %126 = tpu.matmul %5, %125, %cst_43 {dimension_numbers = #tpu.dot_dimension_numbers<[1], [0], [0], [1], [0, 0, 1, 1], [], []>} : vector<24x32xbf16>, vector<32x128xbf16>, vector<24x128xf32> -> vector<24x128xf32>
    %127 = vector.extract_strided_slice %126 {offsets = [0, 0], sizes = [8, 128], strides = [1, 1]} : vector<24x128xf32> to vector<8x128xf32>
    %128 = vector.extract_strided_slice %126 {offsets = [8, 0], sizes = [8, 128], strides = [1, 1]} : vector<24x128xf32> to vector<8x128xf32>
    %129 = arith.addf %127, %128 : vector<8x128xf32>
    %130 = vector.extract_strided_slice %126 {offsets = [16, 0], sizes = [8, 128], strides = [1, 1]} : vector<24x128xf32> to vector<8x128xf32>
    %131 = arith.addf %129, %130 : vector<8x128xf32>
    %132 = arith.subf %131, %34 : vector<8x128xf32>
    %c0_44 = arith.constant 0 : index
    %c3 = arith.constant 3 : index
    %c0_45 = arith.constant 0 : index
    %c0_46 = arith.constant 0 : index
    %133 = vector.load %arg5[%c0_44, %c3, %c0_45, %c0_46] : memref<1x8x8x128xf32, #tpu.memory_space<vmem>>, vector<1x1x8x128xf32>
    %134 = vector.shape_cast %133 : vector<1x1x8x128xf32> to vector<8x128xf32>
    %135 = vector.shape_cast %132 : vector<8x128xf32> to vector<1x1x8x128xf32>
    tpu.vector_store %arg5[%c0_44, %c3, %c0_45, %c0_46], %135 {strides = array<i32>} : memref<1x8x8x128xf32, #tpu.memory_space<vmem>>, vector<1x1x8x128xf32>,
    %cst_47 = arith.constant dense<2147483647> : vector<128xi32>
    %136 = vector.multi_reduction <minsi>, %119, %cst_47 [0] : vector<32x128xi32> to vector<128xi32>
    %137 = vector.shape_cast %136 : vector<128xi32> to vector<1x128xi32>
    %c32_i32_48 = arith.constant 32 : i32
    %138 = vector.broadcast %c32_i32_48 : i32 to vector<1x128xi32>
    %139 = arith.cmpi slt, %137, %138 : vector<1x128xi32>
    %140 = arith.select %139, %137, %40 : vector<1x128xi1>, vector<1x128xi32>
    %141 = vector.broadcast %137 : vector<1x128xi32> to vector<32x128xi32>
    %142 = arith.cmpi eq, %119, %141 : vector<32x128xi32>
    %c32_i32_49 = arith.constant 32 : i32
    %143 = vector.broadcast %c32_i32_49 : i32 to vector<32x128xi32>
    %144 = arith.select %142, %143, %119 : vector<32x128xi1>, vector<32x128xi32>
    %145 = vector.broadcast %140 : vector<1x128xi32> to vector<32x128xi32>
    %146 = arith.cmpi eq, %28, %145 : vector<32x128xi32>
    %cst_50 = arith.constant 1.000000e+00 : f32
    %cst_51 = arith.constant 0.000000e+00 : f32
    %147 = vector.broadcast %cst_50 : f32 to vector<32x128xf32>
    %148 = vector.broadcast %cst_51 : f32 to vector<32x128xf32>
    %149 = arith.select %146, %147, %148 : vector<32x128xi1>, vector<32x128xf32>
    %150 = arith.truncf %149 : vector<32x128xf32> to vector<32x128xbf16>
    %cst_52 = arith.constant dense<0.000000e+00> : vector<24x128xf32>
    %151 = tpu.matmul %5, %150, %cst_52 {dimension_numbers = #tpu.dot_dimension_numbers<[1], [0], [0], [1], [0, 0, 1, 1], [], []>} : vector<24x32xbf16>, vector<32x128xbf16>, vector<24x128xf32> -> vector<24x128xf32>
    %152 = vector.extract_strided_slice %151 {offsets = [0, 0], sizes = [8, 128], strides = [1, 1]} : vector<24x128xf32> to vector<8x128xf32>
    %153 = vector.extract_strided_slice %151 {offsets = [8, 0], sizes = [8, 128], strides = [1, 1]} : vector<24x128xf32> to vector<8x128xf32>
    %154 = arith.addf %152, %153 : vector<8x128xf32>
    %155 = vector.extract_strided_slice %151 {offsets = [16, 0], sizes = [8, 128], strides = [1, 1]} : vector<24x128xf32> to vector<8x128xf32>
    %156 = arith.addf %154, %155 : vector<8x128xf32>
    %157 = arith.subf %156, %34 : vector<8x128xf32>
    %c0_53 = arith.constant 0 : index
    %c4 = arith.constant 4 : index
    %c0_54 = arith.constant 0 : index
    %c0_55 = arith.constant 0 : index
    %158 = vector.load %arg5[%c0_53, %c4, %c0_54, %c0_55] : memref<1x8x8x128xf32, #tpu.memory_space<vmem>>, vector<1x1x8x128xf32>
    %159 = vector.shape_cast %158 : vector<1x1x8x128xf32> to vector<8x128xf32>
    %160 = vector.shape_cast %157 : vector<8x128xf32> to vector<1x1x8x128xf32>
    tpu.vector_store %arg5[%c0_53, %c4, %c0_54, %c0_55], %160 {strides = array<i32>} : memref<1x8x8x128xf32, #tpu.memory_space<vmem>>, vector<1x1x8x128xf32>,
    %cst_56 = arith.constant dense<2147483647> : vector<128xi32>
    %161 = vector.multi_reduction <minsi>, %144, %cst_56 [0] : vector<32x128xi32> to vector<128xi32>
    %162 = vector.shape_cast %161 : vector<128xi32> to vector<1x128xi32>
    %c32_i32_57 = arith.constant 32 : i32
    %163 = vector.broadcast %c32_i32_57 : i32 to vector<1x128xi32>
    %164 = arith.cmpi slt, %162, %163 : vector<1x128xi32>
    %165 = arith.select %164, %162, %40 : vector<1x128xi1>, vector<1x128xi32>
    %166 = vector.broadcast %162 : vector<1x128xi32> to vector<32x128xi32>
    %167 = arith.cmpi eq, %144, %166 : vector<32x128xi32>
    %c32_i32_58 = arith.constant 32 : i32
    %168 = vector.broadcast %c32_i32_58 : i32 to vector<32x128xi32>
    %169 = arith.select %167, %168, %144 : vector<32x128xi1>, vector<32x128xi32>
    %170 = vector.broadcast %165 : vector<1x128xi32> to vector<32x128xi32>
    %171 = arith.cmpi eq, %28, %170 : vector<32x128xi32>
    %cst_59 = arith.constant 1.000000e+00 : f32
    %cst_60 = arith.constant 0.000000e+00 : f32
    %172 = vector.broadcast %cst_59 : f32 to vector<32x128xf32>
    %173 = vector.broadcast %cst_60 : f32 to vector<32x128xf32>
    %174 = arith.select %171, %172, %173 : vector<32x128xi1>, vector<32x128xf32>
    %175 = arith.truncf %174 : vector<32x128xf32> to vector<32x128xbf16>
    %cst_61 = arith.constant dense<0.000000e+00> : vector<24x128xf32>
    %176 = tpu.matmul %5, %175, %cst_61 {dimension_numbers = #tpu.dot_dimension_numbers<[1], [0], [0], [1], [0, 0, 1, 1], [], []>} : vector<24x32xbf16>, vector<32x128xbf16>, vector<24x128xf32> -> vector<24x128xf32>
    %177 = vector.extract_strided_slice %176 {offsets = [0, 0], sizes = [8, 128], strides = [1, 1]} : vector<24x128xf32> to vector<8x128xf32>
    %178 = vector.extract_strided_slice %176 {offsets = [8, 0], sizes = [8, 128], strides = [1, 1]} : vector<24x128xf32> to vector<8x128xf32>
    %179 = arith.addf %177, %178 : vector<8x128xf32>
    %180 = vector.extract_strided_slice %176 {offsets = [16, 0], sizes = [8, 128], strides = [1, 1]} : vector<24x128xf32> to vector<8x128xf32>
    %181 = arith.addf %179, %180 : vector<8x128xf32>
    %182 = arith.subf %181, %34 : vector<8x128xf32>
    %c0_62 = arith.constant 0 : index
    %c5 = arith.constant 5 : index
    %c0_63 = arith.constant 0 : index
    %c0_64 = arith.constant 0 : index
    %183 = vector.load %arg5[%c0_62, %c5, %c0_63, %c0_64] : memref<1x8x8x128xf32, #tpu.memory_space<vmem>>, vector<1x1x8x128xf32>
    %184 = vector.shape_cast %183 : vector<1x1x8x128xf32> to vector<8x128xf32>
    %185 = vector.shape_cast %182 : vector<8x128xf32> to vector<1x1x8x128xf32>
    tpu.vector_store %arg5[%c0_62, %c5, %c0_63, %c0_64], %185 {strides = array<i32>} : memref<1x8x8x128xf32, #tpu.memory_space<vmem>>, vector<1x1x8x128xf32>,
    %cst_65 = arith.constant dense<2147483647> : vector<128xi32>
    %186 = vector.multi_reduction <minsi>, %169, %cst_65 [0] : vector<32x128xi32> to vector<128xi32>
    %187 = vector.shape_cast %186 : vector<128xi32> to vector<1x128xi32>
    %c32_i32_66 = arith.constant 32 : i32
    %188 = vector.broadcast %c32_i32_66 : i32 to vector<1x128xi32>
    %189 = arith.cmpi slt, %187, %188 : vector<1x128xi32>
    %190 = arith.select %189, %187, %40 : vector<1x128xi1>, vector<1x128xi32>
    %191 = vector.broadcast %187 : vector<1x128xi32> to vector<32x128xi32>
    %192 = arith.cmpi eq, %169, %191 : vector<32x128xi32>
    %c32_i32_67 = arith.constant 32 : i32
    %193 = vector.broadcast %c32_i32_67 : i32 to vector<32x128xi32>
    %194 = arith.select %192, %193, %169 : vector<32x128xi1>, vector<32x128xi32>
    %195 = vector.broadcast %190 : vector<1x128xi32> to vector<32x128xi32>
    %196 = arith.cmpi eq, %28, %195 : vector<32x128xi32>
    %cst_68 = arith.constant 1.000000e+00 : f32
    %cst_69 = arith.constant 0.000000e+00 : f32
    %197 = vector.broadcast %cst_68 : f32 to vector<32x128xf32>
    %198 = vector.broadcast %cst_69 : f32 to vector<32x128xf32>
    %199 = arith.select %196, %197, %198 : vector<32x128xi1>, vector<32x128xf32>
    %200 = arith.truncf %199 : vector<32x128xf32> to vector<32x128xbf16>
    %cst_70 = arith.constant dense<0.000000e+00> : vector<24x128xf32>
    %201 = tpu.matmul %5, %200, %cst_70 {dimension_numbers = #tpu.dot_dimension_numbers<[1], [0], [0], [1], [0, 0, 1, 1], [], []>} : vector<24x32xbf16>, vector<32x128xbf16>, vector<24x128xf32> -> vector<24x128xf32>
    %202 = vector.extract_strided_slice %201 {offsets = [0, 0], sizes = [8, 128], strides = [1, 1]} : vector<24x128xf32> to vector<8x128xf32>
    %203 = vector.extract_strided_slice %201 {offsets = [8, 0], sizes = [8, 128], strides = [1, 1]} : vector<24x128xf32> to vector<8x128xf32>
    %204 = arith.addf %202, %203 : vector<8x128xf32>
    %205 = vector.extract_strided_slice %201 {offsets = [16, 0], sizes = [8, 128], strides = [1, 1]} : vector<24x128xf32> to vector<8x128xf32>
    %206 = arith.addf %204, %205 : vector<8x128xf32>
    %207 = arith.subf %206, %34 : vector<8x128xf32>
    %c0_71 = arith.constant 0 : index
    %c6 = arith.constant 6 : index
    %c0_72 = arith.constant 0 : index
    %c0_73 = arith.constant 0 : index
    %208 = vector.load %arg5[%c0_71, %c6, %c0_72, %c0_73] : memref<1x8x8x128xf32, #tpu.memory_space<vmem>>, vector<1x1x8x128xf32>
    %209 = vector.shape_cast %208 : vector<1x1x8x128xf32> to vector<8x128xf32>
    %210 = vector.shape_cast %207 : vector<8x128xf32> to vector<1x1x8x128xf32>
    tpu.vector_store %arg5[%c0_71, %c6, %c0_72, %c0_73], %210 {strides = array<i32>} : memref<1x8x8x128xf32, #tpu.memory_space<vmem>>, vector<1x1x8x128xf32>,
    %cst_74 = arith.constant dense<2147483647> : vector<128xi32>
    %211 = vector.multi_reduction <minsi>, %194, %cst_74 [0] : vector<32x128xi32> to vector<128xi32>
    %212 = vector.shape_cast %211 : vector<128xi32> to vector<1x128xi32>
    %c32_i32_75 = arith.constant 32 : i32
    %213 = vector.broadcast %c32_i32_75 : i32 to vector<1x128xi32>
    %214 = arith.cmpi slt, %212, %213 : vector<1x128xi32>
    %215 = arith.select %214, %212, %40 : vector<1x128xi1>, vector<1x128xi32>
    %216 = vector.broadcast %215 : vector<1x128xi32> to vector<32x128xi32>
    %217 = arith.cmpi eq, %28, %216 : vector<32x128xi32>
    %cst_76 = arith.constant 1.000000e+00 : f32
    %cst_77 = arith.constant 0.000000e+00 : f32
    %218 = vector.broadcast %cst_76 : f32 to vector<32x128xf32>
    %219 = vector.broadcast %cst_77 : f32 to vector<32x128xf32>
    %220 = arith.select %217, %218, %219 : vector<32x128xi1>, vector<32x128xf32>
    %221 = arith.truncf %220 : vector<32x128xf32> to vector<32x128xbf16>
    %cst_78 = arith.constant dense<0.000000e+00> : vector<24x128xf32>
    %222 = tpu.matmul %5, %221, %cst_78 {dimension_numbers = #tpu.dot_dimension_numbers<[1], [0], [0], [1], [0, 0, 1, 1], [], []>} : vector<24x32xbf16>, vector<32x128xbf16>, vector<24x128xf32> -> vector<24x128xf32>
    %223 = vector.extract_strided_slice %222 {offsets = [0, 0], sizes = [8, 128], strides = [1, 1]} : vector<24x128xf32> to vector<8x128xf32>
    %224 = vector.extract_strided_slice %222 {offsets = [8, 0], sizes = [8, 128], strides = [1, 1]} : vector<24x128xf32> to vector<8x128xf32>
    %225 = arith.addf %223, %224 : vector<8x128xf32>
    %226 = vector.extract_strided_slice %222 {offsets = [16, 0], sizes = [8, 128], strides = [1, 1]} : vector<24x128xf32> to vector<8x128xf32>
    %227 = arith.addf %225, %226 : vector<8x128xf32>
    %228 = arith.subf %227, %34 : vector<8x128xf32>
    %c0_79 = arith.constant 0 : index
    %c7 = arith.constant 7 : index
    %c0_80 = arith.constant 0 : index
    %c0_81 = arith.constant 0 : index
    %229 = vector.load %arg5[%c0_79, %c7, %c0_80, %c0_81] : memref<1x8x8x128xf32, #tpu.memory_space<vmem>>, vector<1x1x8x128xf32>
    %230 = vector.shape_cast %229 : vector<1x1x8x128xf32> to vector<8x128xf32>
    %231 = vector.shape_cast %228 : vector<8x128xf32> to vector<1x1x8x128xf32>
    tpu.vector_store %arg5[%c0_79, %c7, %c0_80, %c0_81], %231 {strides = array<i32>} : memref<1x8x8x128xf32, #tpu.memory_space<vmem>>, vector<1x1x8x128xf32>,
    %232 = tpu.concatenate %40, %65, %90, %115, %140, %165, %190, %215 in 0 : vector<1x128xi32>, vector<1x128xi32>, vector<1x128xi32>, vector<1x128xi32>, vector<1x128xi32>, vector<1x128xi32>, vector<1x128xi32>, vector<1x128xi32> -> vector<8x128xi32>
    %c0_82 = arith.constant 0 : index
    %c0_83 = arith.constant 0 : index
    %c0_84 = arith.constant 0 : index
    %233 = vector.load %arg6[%c0_82, %c0_83, %c0_84] : memref<1x8x128xi32, #tpu.memory_space<vmem>>, vector<1x8x128xi32>
    %234 = vector.shape_cast %233 : vector<1x8x128xi32> to vector<8x128xi32>
    %235 = vector.shape_cast %232 : vector<8x128xi32> to vector<1x8x128xi32>
    tpu.vector_store %arg6[%c0_82, %c0_83, %c0_84], %235 {strides = array<i32>} : memref<1x8x128xi32, #tpu.memory_space<vmem>>, vector<1x8x128xi32>,
    return
  }
  func.func @transform_0(%arg0: i32, %arg1: i32) -> (i32, i32, i32) {
    %c0_i32 = arith.constant 0 : i32
    %c0_i32_0 = arith.constant 0 : i32
    %c0_i32_1 = arith.constant 0 : i32
    return %arg0, %c0_i32, %c0_i32_0 : i32, i32, i32
  }
  func.func @transform_1(%arg0: i32, %arg1: i32) -> (i32, i32, i32) {
    %c0_i32 = arith.constant 0 : i32
    %c0_i32_0 = arith.constant 0 : i32
    return %arg0, %c0_i32, %arg1 : i32, i32, i32
  }
  func.func @transform_2(%arg0: i32, %arg1: i32) -> (i32, i32, i32) {
    %c0_i32 = arith.constant 0 : i32
    %c0_i32_0 = arith.constant 0 : i32
    %c0_i32_1 = arith.constant 0 : i32
    return %arg0, %c0_i32, %c0_i32_0 : i32, i32, i32
  }
  func.func @transform_3(%arg0: i32, %arg1: i32) -> (i32, i32, i32, i32) {
    %c0_i32 = arith.constant 0 : i32
    %c0_i32_0 = arith.constant 0 : i32
    %c0_i32_1 = arith.constant 0 : i32
    return %arg0, %c0_i32, %c0_i32_0, %arg1 : i32, i32, i32, i32
  }
  func.func @transform_4(%arg0: i32, %arg1: i32) -> (i32, i32, i32) {
    %c0_i32 = arith.constant 0 : i32
    %c0_i32_0 = arith.constant 0 : i32
    return %arg0, %c0_i32, %arg1 : i32, i32, i32
  }
}

</mosaic_0001>

<bundles_post_ra>
// kernel: tpu_custom_call.1
= control target key start
LH: loop header
LB: loop body
LE: loop exit
PB: predicated region body
PF: predicated region fallthrough
CT: control target
= control target key end

     0   :  { %s2363_s0 = inlined_call_operand.hbm [shape: f32[2,32,3], index: 0, kind: input, shape index: {}]   ;;  %s2364_s1 = inlined_call_operand.hbm [shape: f32[2,3,128], index: 1, kind: input, shape index: {}]   ;;  %s2365_s2 = inlined_call_operand.hbm [shape: bf16[2,24,32], index: 2, kind: input, shape index: {}]   ;;  %s2366_s3 = inlined_call_operand.hbm [shape: f32[2,8,8,128], index: 3, kind: output, shape index: {0}]   ;;  %s2367_s4 = inlined_call_operand.hbm [shape: s32[2,8,128], index: 4, kind: output, shape index: {1}]  }
   0x1   :  { %2371 = sst [smem:[#allocation17_spill]] %s2363_s0 }
   0x2   :  { %2372 = sst [smem:[#allocation18_spill]] %s2364_s1 }
   0x3   :  { %10 = vsyncpa [#allocation3], 0 }
   0x4   :  { %12 = vsyncpa [#allocation3 + $0x1], 0 }
   0x5   :  { %13 = vsyncpa [#allocation6], 0 }
   0x6   :  { %15 = vsyncpa [#allocation6 + $0x1], 0 }
   0x7   :  { %16 = vsyncpa [#allocation4], 0 }
   0x8   :  { %18 = vsyncpa [#allocation4 + $0x1], 0 }
   0x9   :  { %19 = vsyncpa [#allocation10], 0 }
   0xa   :  { %21 = vsyncpa [#allocation10 + $0x1], 0  ;;  %s1887_s15 = smov 0   ;;  %s1889_s16 = smov 0  }
   0xb   :  { %s1891_s17 = smov 0   ;;  %s1893_s18 = smov 0  }
   0xc   :  { %s1895_s19 = smov 0   ;;  %s1897_s20 = smov 0  }
   0xd LB: > { %s1918_s21 = sadd.s32 4294967295, %s1845_s20   ;;  %s1363_s22 = sadd.s32 4294967294, %s1845_s20   ;;  %s1845_s20 = sphi %s1897_s20, %s27_s20   ;;  %s1841_s19 = sphi %s1895_s19, %s2397_s19   ;;  %s1837_s18 = sphi %s1893_s18, %s2396_s18   ;;  %s1833_s17 = sphi %s1891_s17, %s2395_s17   ;;  %s1829_s16 = sphi %s1889_s16, %s2394_s16   ;;  %s1825_s15 = sphi %s1887_s15, %s2393_s15  }
   0xe   : > { %s39_s23 = sadd.s32 1, %s1841_s19  ;;  %s46_s24 = sadd.s32 1, %s1833_s17 }
   0xf   : > { %p41_p0 = scmp.ge.s32.totalorder %s39_s23, 2  ;;  %p53_p1 = scmp.ne.s32.totalorder %s1833_s17, %s1829_s16 }
  0x10   : > { %p54_p2 = scmp.eq.s32.totalorder %s1845_s20, 0  ;;  %p59_p3 = scmp.ne.s32.totalorder %s1829_s16, %s1825_s15 }
  0x11   : > { %s2399_s23 = smov (%p41_p0, %s39_s23), 0  ;;  %p60_p5 = scmp.eq.s32.totalorder %s1918_s21, 0 }
  0x12   : > { %2373 = sst [smem:[#allocation15_spill]] %s2399_s23  ;;  %p1930_p4 = por %p54_p2, %p53_p1 }
  0x13   : > { %s43_s26 = ssub.s32 %s1841_s19, %s2399_s23  ;;  %p139_p6 = scmp.eq.s32.totalorder %s1918_s21, 1 }
  0x14   : > { %p44_p7 = scmp.eq.s32.totalorder %s43_s26, 0  ;;  %p1938_p8 = por %p60_p5, %p59_p3 }
  0x15   : > { %p1942_p9 = por %p139_p6, %p53_p1  ;;  %p145_p10 = scmp.eq.s32.totalorder %s1363_s22, 1 }
  0x16   : > { %s2375_s27 = scalar_select %p1938_p8, 1, 0 }
  0x17   : > { %s2376_s28 = scalar_select %p1942_p9, 1, 0 }
  0x18   : > { %s1947_s29 = scalar_select %p44_p7, %s1833_s17, %s46_s24  }
  0x19   : > { %p1949_p11 = por %p145_p10, %p59_p3  ;;  %p1569_p13 = scmp.lt.s32.totalorder %s1845_s20, 2 }
  0x1a   : > { %2377 = sst [smem:[#allocation16_spill]] %s1947_s29  ;;  %s1956_s5 = sand.u32 1, %s1833_s17  }
  0x1b   : > { %s2378_s30 = scalar_select %p1949_p11, 1, 0 }
  0x1c   : > { %s214_s6 = sand.u32 1, %s1845_s20   ;;  %s1369_s7 = sshll.u32 %s1956_s5, 2 }
  0x1d   : > { %p1962_p0 = pnand %p1569_p13, %p1930_p4  ;;  %s1370_s9 = sshll.u32 %s1841_s19, 6 }
  0x1e   : > { %s2380_s1 = sld [smem:[#allocation18_spill]]  ;;  %s218_s13 = scalar_lea.vmem [#allocation5], %s1369_s7 }
  0x1f   : > { %s226_s14 = sshll.u32 %s218_s13, 4  ;;  %s1976_s24 = scalar_lea.sflag [#allocation6], %s214_s6  ;;  %s1973_s14 = int_to_ptr.vmem [resolvable:$true] %s226_s14 }
  0x20   : > { %p1982_p3 = pneg %p1962_p0 }
  0x24   : > { %s1970_s12 = scalar_lea.hbm %s2380_s1, %s1370_s9  ;;  %s1642_s10 = scalar_lea.hbm %s2380_s1, 128 }
  0x25   : > { %s1637_s25 = scalar_lea.hbm %s1970_s12, 64  ;;  %p1643_p6 = scmp.lt.u32.totalorder %s1970_s12, %s2380_s1 }
  0x26   : > { %p1638_p2 = scmp.ne.s32.totalorder %s1970_s12, %s1637_s25  ;;  %p1644_p7 = scmp.lt.u32.totalorder %s1642_s10, %s1637_s25 }
  0x27   : > { %p1646_p13 = scmp.lt.u32.totalorder %s1637_s25, %s1970_s12 }
  0x28   : > { %p1640_p4 = pnand %p1982_p3, %p1638_p2  ;;  %p1645_p10 = por %p1644_p7, %p1643_p6 }
  0x2a   : > { %p1641_p5 = pneg %p1640_p4  ;;  %p1647_p12 = por %p1646_p13, %p1645_p10 }
  0x2c   : > { %p1648_p1 = pnand %p1647_p12, %p1641_p5 }
  0x2e   : > { %1651 = shalt.err (!%p1648_p1)
}
  0x2f   : > { %s1652_s6 = scalar_lea.vmem %s1973_s14, 64  ;;  %s1847_s9 = smov [#allocation5]  }
  0x30   : > { %p1653_p2 = scmp.ne.s32.totalorder %s1973_s14, %s1652_s6  ;;  %s1657_s7 = sshll.u32 %s1847_s9, 4  ;;  %s1658_s7 = int_to_ptr.vmem [resolvable:$false] %s1657_s7 }
  0x31   : > { %s1659_s11 = scalar_lea.vmem %s1658_s7, 128  ;;  %p1660_p9 = scmp.lt.s32.totalorder %s1973_s14, %s1658_s7 }
  0x32   : > { %p1655_p4 = pnand %p1653_p2, %p1982_p3  ;;  %p1661_p8 = scmp.lt.s32.totalorder %s1659_s11, %s1652_s6 }
  0x34   : > { %p1656_p11 = pneg %p1655_p4  ;;  %p1662_p6 = por %p1661_p8, %p1660_p9 }
  0x36   : > { %p1663_p7 = pnand %p1662_p6, %p1656_p11 }
  0x38   : > { %1666 = shalt.err (!%p1663_p7)
}
  0x39   : > { %1558 = dma.hbm_to_vmem [thread:$0]  (!%p1962_p0), %s1970_s12, 64, %s1973_s14, %s1976_s24  }
  0x3a   : > { %p252_p12 = scmp.lt.s32.totalorder %s1845_s20, 3  ;;  %p2382_p1 = scmp.ge.s32.totalorder %s1845_s20, 1 }
  0x3b   : > { %s1366_s10 = sshll.u32 %s1956_s5, 5  ;;  %s1441_s13 = sshll.u32 %s1841_s19, 9 }
  0x3c   : > { %p2009_p5 = pnand %p2382_p1, %p252_p12  ;;  %s2384_s0 = sld [smem:[#allocation17_spill]] }
  0x3d   : > { %s197_s11 = scalar_lea.vmem [#allocation2], %s1366_s10  ;;  %s194_s12 = scalar_lea.sflag [#allocation3], %s1956_s5 }
  0x3e   : > { %s2383_s25 = scalar_select %p2009_p5, 1, 0 }
  0x3f   : > { %s204_s22 = sshll.u32 %s197_s11, 4  ;;  %s2020_s22 = int_to_ptr.vmem [resolvable:$true] %s204_s22 }
  0x42   : > { %s2018_s7 = scalar_lea.hbm %s2384_s0, %s1441_s13  ;;  %s1672_s6 = scalar_lea.hbm %s2384_s0, 1024 }
  0x43   : > { %s1667_s14 = scalar_lea.hbm %s2018_s7, 512  ;;  %p1673_p10 = scmp.lt.u32.totalorder %s2018_s7, %s2384_s0 }
  0x44   : > { %p1668_p8 = scmp.ne.s32.totalorder %s2018_s7, %s1667_s14  ;;  %p1674_p13 = scmp.lt.u32.totalorder %s1672_s6, %s1667_s14 }
  0x45   : > { %p1676_p4 = scmp.lt.u32.totalorder %s1667_s14, %s2018_s7 }
  0x46   : > { %p1670_p9 = pnand %p1668_p8, %p1982_p3  ;;  %p1675_p2 = por %p1674_p13, %p1673_p10 }
  0x48   : > { %p1671_p11 = pneg %p1670_p9  ;;  %p1677_p6 = por %p1676_p4, %p1675_p2 }
  0x4a   : > { %p1678_p7 = pnand %p1677_p6, %p1671_p11 }
  0x4c   : > { %1681 = shalt.err (!%p1678_p7)
}
  0x4d   : > { %s1682_s10 = scalar_lea.vmem %s2020_s22, 512  ;;  %s1848_s1 = smov [#allocation2]  }
  0x4e   : > { %p1683_p12 = scmp.ne.s32.totalorder %s2020_s22, %s1682_s10  ;;  %s1687_s23 = sshll.u32 %s1848_s1, 4  ;;  %s1688_s23 = int_to_ptr.vmem [resolvable:$false] %s1687_s23 }
  0x4f   : > { %s1689_s11 = scalar_lea.vmem %s1688_s23, 1024  ;;  %p1690_p9 = scmp.lt.s32.totalorder %s2020_s22, %s1688_s23 }
  0x50   : > { %p1685_p1 = pnand %p1683_p12, %p1982_p3  ;;  %p1691_p5 = scmp.lt.s32.totalorder %s1689_s11, %s1682_s10 }
  0x52   : > { %p1686_p8 = pneg %p1685_p1  ;;  %p1692_p10 = por %p1691_p5, %p1690_p9 }
  0x54   : > { %p1693_p13 = pnand %p1692_p10, %p1686_p8 }
  0x56   : > { %1696 = shalt.err (!%p1693_p13)
}
  0x57   : > { %s1849_s14 = smov 128   ;;  %s1850_s6 = smov 8  }
  0x58   : > { %1555 = dma.hbm_to_vmem [thread:$0]  (!%p1962_p0), %s2018_s7, 512, %s2020_s22, %s194_s12, %s1849_s14, %s1849_s14, %s1850_s6  }
  0x59   : > { %s1540_s13 = smul.u32 192, %s1841_s19  ;;  %s1702_s7 = scalar_lea.hbm %s2365_s2, 384 }
  0x5a   : > { %s2385_s9 = smul.u32 12, %s1956_s5 }
  0x5b   : > { %s2054_s0 = scalar_lea.hbm %s2365_s2, %s1540_s13 }
  0x5c   : > { %s237_s1 = scalar_lea.vmem [#allocation7], %s2385_s9  ;;  %s1697_s29 = scalar_lea.hbm %s2054_s0, 192 }
  0x5d   : > { %s244_s23 = sshll.u32 %s237_s1, 4  ;;  %p1698_p5 = scmp.ne.s32.totalorder %s2054_s0, %s1697_s29  ;;  %s2049_s23 = int_to_ptr.vmem [resolvable:$true] %s244_s23 }
  0x5e   : > { %p1703_p4 = scmp.lt.u32.totalorder %s2054_s0, %s2365_s2  ;;  %p1704_p6 = scmp.lt.u32.totalorder %s1702_s7, %s1697_s29 }
  0x5f   : > { %p1700_p11 = pnand %p1698_p5, %p1982_p3  ;;  %p1706_p12 = scmp.lt.u32.totalorder %s1697_s29, %s2054_s0 }
  0x60   : > { %p1705_p7 = por %p1704_p6, %p1703_p4 }
  0x61   : > { %p1701_p2 = pneg %p1700_p11 }
  0x62   : > { %p1707_p1 = por %p1706_p12, %p1705_p7 }
  0x64   : > { %p1708_p8 = pnand %p1707_p1, %p1701_p2 }
  0x66   : > { %1711 = shalt.err (!%p1708_p8)
}
  0x67   : > { %s1712_s6 = scalar_lea.vmem %s2049_s23, 192  ;;  %s1851_s13 = smov [#allocation7]  }
  0x68   : > { %p1713_p9 = scmp.ne.s32.totalorder %s2049_s23, %s1712_s6  ;;  %s1717_s9 = sshll.u32 %s1851_s13, 4  ;;  %s1718_s9 = int_to_ptr.vmem [resolvable:$false] %s1717_s9 }
  0x69   : > { %s1719_s1 = scalar_lea.vmem %s1718_s9, 384  ;;  %p1720_p5 = scmp.lt.s32.totalorder %s2049_s23, %s1718_s9 }
  0x6a   : > { %p1715_p10 = pnand %p1713_p9, %p1982_p3  ;;  %p1721_p11 = scmp.lt.s32.totalorder %s1719_s1, %s1712_s6 }
  0x6c   : > { %p1716_p13 = pneg %p1715_p10  ;;  %p1722_p4 = por %p1721_p11, %p1720_p5 }
  0x6e   : > { %p1723_p6 = pnand %p1722_p4, %p1716_p13 }
  0x70   : > { %1726 = shalt.err (!%p1723_p6)
}
  0x71   : > { %s1852_s29 = smov 64   ;;  %s1853_s10 = smov 4  }
  0x72   : > { %1561 = dma.hbm_to_vmem [thread:$0]  (!%p1962_p0), %s2054_s0, 192, %s2049_s23, %s1976_s24, %s1852_s29, %s1852_s29, %s1853_s10  }
  0x73   : > { %p2386_p3 = scmp.ne.s32.totalorder %s2383_s25, 0 }
  0x74   : > { %s2081_s26 = sand.u32 (!%p2386_p3), 1, %s1829_s16   ;;  %p2387_p2 = scmp.ne.s32.totalorder (!%p2386_p3), %s2375_s27, 0 }
  0x75   : > { %256 = sbr.rel (%p2386_p3) target bundleno = 688 (0x2b0), region = 32  ;;  %s1373_s11 = sshll.u32 (!%p2386_p3), %s2081_s26, 5 }
  0x76   : > { %s259_s22 = scalar_lea.sflag (!%p2386_p3), [#allocation3], %s2081_s26  ;;  %s262_s5 = scalar_lea.vmem (!%p2386_p3), [#allocation2], %s1373_s11 }
  0x7c   : > { %1808 = dma.done.wait (%p2387_p2), %s259_s22, 512  }
  0x7d   : > { %1810 = vsyncadd (%p2387_p2), %s259_s22, 4294966784  ;;  %s267_s0 = sand.u32 1, %s1918_s21   ;;  %s1374_s8 = sshll.u32 %s2081_s26, 2 }
  0x7e   : > { %s268_s24 = scalar_lea.sflag [#allocation6], %s267_s0  ;;  %s2091_s25 = scalar_lea.vmem [#allocation5], %s1374_s8 }
  0x7f   : > { %1812 = dma.done.wait (%p2387_p2), %s268_s24, 256  }
  0x80   : > { %1814 = vsyncadd (%p2387_p2), %s268_s24, 4294967040  ;;  %v1854_v0 = vmov 0   ;;  %v323_v1 = vld [vmem:[%s262_s5 + $0x10] sm:$0xff]  ;;  %v321_v2 = vld [vmem:[%s262_s5] sm:$0xff]  ;;  %v1855_v5 = vmov 1   ;;  %v1856_v6 = vmov 2   ;;  %v349_v8 = vlaneseq }
  0x81   : > { %1630 = vset.pattern.permute.xlu1 %v1854_v0  ;;  %1629 = vset.pattern.permute.xlu0 %v1854_v0  ;;  %v324_v3 = vld [vmem:[%s262_s5 + $0x18] sm:$0xff]  ;;  %v322_v4 = vld [vmem:[%s262_s5 + $0x8] sm:$0xff]  ;;  %s1541_s21 = smul.u32 12, %s2081_s26  ;;  %vm487_vm0 = vcmask 261120   ;;  %v2112_v16 = vld [vmem:[%s2091_s25] sm:$0x7] }
  0x82   : > { %341 = vperm.xlu1 %1630, %v323_v1   ;;  %331 = vperm.xlu0 %1629, %v321_v2   ;;  %v2107_v11 = vshrl.u32 %v349_v8, 7  ;;  %s1376_s23 = sshll.u32 %s2081_s26, 3  ;;  %s1375_s12 = sshll.u32 %s2081_s26, 6 }
  0x83   : > { %s2098_s27 = scalar_lea.vmem [#allocation7], %s1541_s21  ;;  %s319_s7 = scalar_lea.vmem [#allocation9], %s1376_s23 }
  0x84   : > { %v2101_v7 = vld [vmem:[%s2098_s27] sm:$0xff]   ;;  %v383_v14 = vsub.s32 1, %v2107_v11  ;;  %v351_v15 = vsub.s32 0, %v2107_v11  ;;  %v415_v21 = vsub.s32 2, %v2107_v11  ;;  %v2119_v55 = vadd.s32 8, %v2107_v11  ;;  %s2266_s14 = scalar_lea.vmem [#allocation8], %s1375_s12 }
  0x85   : > { %1479 = vmatprep.mubr.msk.bf16.mxu0 %vm487_vm0, %v2101_v7  ;;  %1487 = vmatprep.mubr.msk.bf16.mxu1 %vm487_vm0, %v2101_v7  ;;  %v2124_v63 = vadd.s32 16, %v2107_v11  ;;  %v2127_v0 = vadd.s32 24, %v2107_v11  ;;  %s1438_s6 = sshll.u32 %s1837_s18, 7  ;;  %s1205_s13 = sshll.u32 %s319_s7, 4  ;;  %s1206_s13 = int_to_ptr.vmem [resolvable:$true] %s1205_s13 }
  0x86   : > { %346 = vperm.xlu1 %1630, %v324_v3   ;;  %336 = vperm.xlu0 %1629, %v322_v4   ;;  %v384_v17 = vrot.slane %v2112_v16, %v383_v14  ;;  %v352_v20 = vrot.slane %v2112_v16, %v351_v15  ;;  %v416_v28 = vrot.slane %v2112_v16, %v415_v21  ;;  %s2273_s29 = scalar_lea.hbm %s2367_s4, %s1438_s6  ;;  %s1174_s10 = scalar_lea.sflag [#allocation10], %s2081_s26 }
  0x87   : > { %s1727_s11 = scalar_lea.vmem %s1206_s13, 128  ;;  %p2388_p7 = scmp.ne.s32.totalorder %s2376_s28, 0 }
  0x88   : > { %p1728_p0 = scmp.ne.s32.totalorder %s1206_s13, %s1727_s11  ;;  %s1858_s22 = smov [#allocation9]  }
  0x89   : > { %s1731_s5 = sshll.u32 %s1858_s22, 4  ;;  %s1732_s5 = int_to_ptr.vmem [resolvable:$false] %s1731_s5 }
  0x8a   : > { %1632 = vset.pattern.permute.xlu1 %v1855_v5  ;;  %1631 = vset.pattern.permute.xlu0 %v1855_v5  ;;  %p1729_p12 = pnand %p1728_p0, %p2388_p7  ;;  %s1733_s0 = scalar_lea.vmem %s1732_s5, 256 }
  0x8b   : > { %370 = vperm.xlu1 %1632, %v322_v4   ;;  %366 = vperm.xlu0 %1631, %v321_v2   ;;  %p1734_p8 = scmp.lt.s32.totalorder %s1206_s13, %s1732_s5  ;;  %p1735_p9 = scmp.lt.s32.totalorder %s1733_s0, %s1727_s11 }
  0x8c   : > { %p1730_p1 = pneg %p1729_p12 }
  0x8d   : > { %p1736_p10 = por %p1735_p9, %p1734_p8 }
  0x8f   : > { %374 = vperm.xlu1 %1632, %v323_v1   ;;  %378 = vperm.xlu0 %1631, %v324_v3   ;;  %p1737_p13 = pnand %p1736_p10, %p1730_p1 }
  0x93   : > { %1633 = vset.pattern.permute.xlu1 %v1856_v6  ;;  %1634 = vset.pattern.permute.xlu0 %v1856_v6 }
  0x94   : > { %398 = vperm.xlu1 %1633, %v321_v2   ;;  %402 = vperm.xlu0 %1634, %v322_v4  }
  0x98   : > { %406 = vperm.xlu1 %1633, %v323_v1  }
  0x9c   : > { %410 = vperm.xlu1 %1633, %v324_v3  }
 0x101   : > { %v342_v9 = vpop.permute.xlu1 %341  ;;  %v332_v10 = vpop.permute.xlu0 %331 }
 0x102   : > { %v353_v22 = vsub.f32 %v332_v10, %v352_v20  ;;  %v355_v36 = vsub.f32 %v342_v9, %v352_v20 }
 0x104   : > { %v357_v29 = vmul.f32 %v353_v22, %v353_v22  ;;  %v359_v47 = vmul.f32 %v355_v36, %v355_v36 }
 0x105   : > { %v347_v12 = vpop.permute.xlu1 %346  ;;  %v337_v13 = vpop.permute.xlu0 %336 }
 0x106   : > { %v354_v23 = vsub.f32 %v337_v13, %v352_v20  ;;  %v356_v45 = vsub.f32 %v347_v12, %v352_v20 }
 0x108   : > { %v358_v30 = vmul.f32 %v354_v23, %v354_v23  ;;  %v360_v54 = vmul.f32 %v356_v45, %v356_v45  ;;  %v1857_v23 = vmov 1.0|1.0  }
 0x10a   : > { %v371_v18 = vpop.permute.xlu1 %370  ;;  %v367_v19 = vpop.permute.xlu0 %366 }
 0x10b   : > { %v386_v24 = vsub.f32 %v371_v18, %v384_v17  ;;  %v385_v25 = vsub.f32 %v367_v19, %v384_v17 }
 0x10d   : > { %v390_v31 = vmul.f32 %v386_v24, %v386_v24  ;;  %v389_v32 = vmul.f32 %v385_v25, %v385_v25 }
 0x10e   : > { %v375_v26 = vpop.permute.xlu1 %374  ;;  %v379_v27 = vpop.permute.xlu0 %378 }
 0x10f   : > { %v387_v33 = vsub.f32 %v375_v26, %v384_v17  ;;  %v394_v39 = vadd.f32 %v390_v31, %v358_v30  ;;  %v393_v40 = vadd.f32 %v389_v32, %v357_v29  ;;  %v388_v42 = vsub.f32 %v379_v27, %v384_v17  ;;  %v2145_v26 = vld [vmem:[%s2098_s27 + $0x8] ss:$0 sps:$4 sm:$0xff]  }
 0x111   : > { %v391_v41 = vmul.f32 %v387_v33, %v387_v33  ;;  %v392_v52 = vmul.f32 %v388_v42, %v388_v42 }
 0x113   : > { %v399_v34 = vpop.permute.xlu1 %398  ;;  %v403_v35 = vpop.permute.xlu0 %402  ;;  %v395_v51 = vadd.f32 %v391_v41, %v359_v47  ;;  %v396_v59 = vadd.f32 %v392_v52, %v360_v54 }
 0x114   : > { %v417_v37 = vsub.f32 %v399_v34, %v416_v28  ;;  %v418_v38 = vsub.f32 %v403_v35, %v416_v28 }
 0x116   : > { %v421_v43 = vmul.f32 %v417_v37, %v417_v37  ;;  %v422_v44 = vmul.f32 %v418_v38, %v418_v38 }
 0x117   : > { %v407_v46 = vpop.permute.xlu1 %406 }
 0x118   : > { %v425_v48 = vadd.f32 %v421_v43, %v393_v40  ;;  %v426_v49 = vadd.f32 %v422_v44, %v394_v39  ;;  %v419_v50 = vsub.f32 %v407_v46, %v416_v28 }
 0x11a   : > { %v423_v53 = vmul.f32 %v419_v50, %v419_v50  ;;  %vm434_vm1 = vcmp.lt.f32.partialorder %v425_v48, 0.25  ;;  %vm435_vm2 = vcmp.lt.f32.partialorder %v426_v49, 0.25 }
 0x11b   : > { %v411_v56 = vpop.permute.xlu1 %410  ;;  %v438_v61 = vsel %vm434_vm1, %v2107_v11, 32  ;;  %v439_v62 = vsel %vm435_vm2, %v2119_v55, 32 }
 0x11c   : > { %v427_v57 = vadd.f32 %v423_v53, %v395_v51  ;;  %v420_v58 = vsub.f32 %v411_v56, %v416_v28  ;;  %vm444_vm4 = vcmp.lt.s32.totalorder %v438_v61, %v439_v62 }
 0x11d   : > { %v445_v4 = vsel %vm444_vm4, %v438_v61, %v439_v62 }
 0x11e   : > { %v424_v60 = vmul.f32 %v420_v58, %v420_v58  ;;  %vm436_vm3 = vcmp.lt.f32.partialorder %v427_v57, 0.25 }
 0x11f   : > { %v440_v2 = vsel %vm436_vm3, %v2124_v63, 32 }
 0x120   : > { %v428_v1 = vadd.f32 %v424_v60, %v396_v59 }
 0x122   : > { %vm437_vm5 = vcmp.lt.f32.partialorder %v428_v1, 0.25 }
 0x123   : > { %v441_v3 = vsel %vm437_vm5, %v2127_v0, 32 }
 0x124   : > { %vm446_vm6 = vcmp.lt.s32.totalorder %v440_v2, %v441_v3 }
 0x125   : > { %v447_v5 = vsel %vm446_vm6, %v440_v2, %v441_v3 }
 0x126   : > { %vm448_vm7 = vcmp.lt.s32.totalorder %v445_v4, %v447_v5 }
 0x127   : > { %v449_v6 = vsel %vm448_vm7, %v445_v4, %v447_v5 }
 0x128   : > { %v450_v8 = vrot.slane %v449_v6, 4 }
 0x12a   : > { %vm451_vm8 = vcmp.lt.s32.totalorder %v449_v6, %v450_v8 }
 0x12b   : > { %v452_v9 = vsel %vm451_vm8, %v449_v6, %v450_v8 }
 0x12c   : > { %v453_v10 = vrot.slane %v452_v9, 2 }
 0x12e   : > { %vm454_vm9 = vcmp.lt.s32.totalorder %v452_v9, %v453_v10 }
 0x12f   : > { %v455_v12 = vsel %vm454_vm9, %v452_v9, %v453_v10 }
 0x130   : > { %v456_v13 = vrot.slane %v455_v12, 1 }
 0x132   : > { %vm457_vm10 = vcmp.lt.s32.totalorder %v455_v12, %v456_v13 }
 0x133   : > { %v458_v14 = vsel %vm457_vm10, %v455_v12, %v456_v13 }
 0x134   : > { %vm459_vm11 = vcmp.lt.s32.totalorder %v458_v14, 32  ;;  %vm461_vm12 = vcmp.eq.s32.totalorder %v438_v61, %v458_v14  ;;  %vm462_vm13 = vcmp.eq.s32.totalorder %v439_v62, %v458_v14  ;;  %vm463_vm14 = vcmp.eq.s32.totalorder %v440_v2, %v458_v14 }
 0x135   : > { %v2131_v15 = vsel %vm459_vm11, %v458_v14, 0  ;;  %vm464_vm15 = vcmp.eq.s32.totalorder %v441_v3, %v458_v14  ;;  %v465_v17 = vsel %vm461_vm12, 32, %v438_v61  ;;  %v466_v18 = vsel %vm462_vm13, 32, %v439_v62 }
 0x136   : > { %v467_v19 = vsel %vm463_vm14, 32, %v440_v2  ;;  %v468_v20 = vsel %vm464_vm15, 32, %v441_v3  ;;  %vm546_vm1 = vcmp.lt.s32.totalorder %v465_v17, %v466_v18  ;;  %vm469_vm2 = vcmp.eq.s32.totalorder %v2107_v11, %v2131_v15 }
 0x137   : > { %v547_v21 = vsel %vm546_vm1, %v465_v17, %v466_v18  ;;  %vm548_vm3 = vcmp.lt.s32.totalorder %v467_v19, %v468_v20  ;;  %vm470_vm4 = vcmp.eq.s32.totalorder %v2119_v55, %v2131_v15  ;;  %vm471_vm5 = vcmp.eq.s32.totalorder %v2124_v63, %v2131_v15 }
 0x138   : > { %v549_v22 = vsel %vm548_vm3, %v467_v19, %v468_v20  ;;  %vm1379_vm6 = vmpackc.low %vm470_vm4, %vm469_vm2  ;;  %vm472_vm7 = vcmp.eq.s32.totalorder %v2127_v0, %v2131_v15 }
 0x139   : > { %vm550_vm8 = vcmp.lt.s32.totalorder %v547_v21, %v549_v22  ;;  %1475 = vmatprep.subr.msk.bf16.mxu0 %vm1379_vm6, %v1857_v23  ;;  %vm1381_vm9 = vmpackc.low %vm472_vm7, %vm471_vm5 }
 0x13a   : > { %v551_v24 = vsel %vm550_vm8, %v547_v21, %v549_v22  ;;  %1476 = vmatpush3.bf16.msk.msra.mxu0 %vm1379_vm6, %v1857_v23 }
 0x13b   : > { %v552_v25 = vrot.slane %v551_v24, 4  ;;  %1477 = vmatprep.subr.msk.bf16.mxu0 %vm1381_vm9, %v1857_v23 }
 0x13d   : > { %vm553_vm10 = vcmp.lt.s32.totalorder %v551_v24, %v552_v25 }
 0x13e   : > { %v554_v27 = vsel %vm553_vm10, %v551_v24, %v552_v25  ;;  %1478 = vmatpush3.bf16.msk.msra.mxu0 %vm1381_vm9, %v1857_v23 }
 0x13f   : > { %v555_v28 = vrot.slane %v554_v27, 2 }
 0x141   : > { %vm556_vm11 = vcmp.lt.s32.totalorder %v554_v27, %v555_v28  ;;  %1480 = vmatmul.mubr.msk.bf16.vlgmr.msra.gmra.mrb[0].mxu0 %vm487_vm0, %v2145_v26 }
 0x142   : > { %v557_v29 = vsel %vm556_vm11, %v554_v27, %v555_v28  ;;  %1495 = vmatprep.mubr.msk.bf16.mxu0 %vm487_vm0, %v2101_v7 }
 0x143   : > { %v558_v30 = vrot.slane %v557_v29, 1 }
 0x145   : > { %vm559_vm12 = vcmp.lt.s32.totalorder %v557_v29, %v558_v30 }
 0x146   : > { %v560_v31 = vsel %vm559_vm12, %v557_v29, %v558_v30 }
 0x147   : > { %vm563_vm13 = vcmp.eq.s32.totalorder %v465_v17, %v560_v31  ;;  %vm564_vm14 = vcmp.eq.s32.totalorder %v466_v18, %v560_v31  ;;  %vm565_vm15 = vcmp.eq.s32.totalorder %v467_v19, %v560_v31  ;;  %vm566_vm1 = vcmp.eq.s32.totalorder %v468_v20, %v560_v31 }
 0x148   : > { %v567_v32 = vsel %vm563_vm13, 32, %v465_v17  ;;  %v568_v33 = vsel %vm564_vm14, 32, %v466_v18  ;;  %v569_v34 = vsel %vm565_vm15, 32, %v467_v19  ;;  %v570_v35 = vsel %vm566_vm1, 32, %v468_v20 }
 0x149   : > { %vm634_vm2 = vcmp.lt.s32.totalorder %v567_v32, %v568_v33  ;;  %vm636_vm3 = vcmp.lt.s32.totalorder %v569_v34, %v570_v35  ;;  %vm561_vm4 = vcmp.lt.s32.totalorder %v560_v31, 32  ;;  %vm1154_vm15 = vcmask 1040384  }
 0x14a   : > { %v635_v36 = vsel %vm634_vm2, %v567_v32, %v568_v33  ;;  %v637_v37 = vsel %vm636_vm3, %v569_v34, %v570_v35  ;;  %v562_v38 = vsel %vm561_vm4, %v560_v31, %v2131_v15  ;;  %vm1156_vm1 = vcmask 1041408  }
 0x14b   : > { %vm638_vm5 = vcmp.lt.s32.totalorder %v635_v36, %v637_v37  ;;  %vm571_vm6 = vcmp.eq.s32.totalorder %v2107_v11, %v562_v38  ;;  %vm572_vm7 = vcmp.eq.s32.totalorder %v2119_v55, %v562_v38  ;;  %vm573_vm9 = vcmp.eq.s32.totalorder %v2124_v63, %v562_v38 }
 0x14c   : > { %v639_v39 = vsel %vm638_vm5, %v635_v36, %v637_v37  ;;  %vm1385_vm8 = vmpackc.low %vm572_vm7, %vm571_vm6  ;;  %vm574_vm10 = vcmp.eq.s32.totalorder %v2127_v0, %v562_v38  ;;  %v1155_v52 = vsel %vm1154_vm15, %v2131_v15, %v562_v38 }
 0x14d   : > { %v640_v40 = vrot.slane %v639_v39, 4  ;;  %1483 = vmatprep.subr.msk.bf16.mxu1 %vm1385_vm8, %v1857_v23  ;;  %vm1387_vm11 = vmpackc.low %vm574_vm10, %vm573_vm9 }
 0x14e   : > { %1484 = vmatpush3.bf16.msk.msra.mxu1 %vm1385_vm8, %v1857_v23 }
 0x14f   : > { %vm641_vm12 = vcmp.lt.s32.totalorder %v639_v39, %v640_v40  ;;  %1485 = vmatprep.subr.msk.bf16.mxu1 %vm1387_vm11, %v1857_v23 }
 0x150   : > { %v642_v41 = vsel %vm641_vm12, %v639_v39, %v640_v40 }
 0x151   : > { %v643_v42 = vrot.slane %v642_v41, 2 }
 0x152   : > { %1486 = vmatpush3.bf16.msk.msra.mxu1 %vm1387_vm11, %v1857_v23 }
 0x153   : > { %vm644_vm13 = vcmp.lt.s32.totalorder %v642_v41, %v643_v42 }
 0x154   : > { %v645_v43 = vsel %vm644_vm13, %v642_v41, %v643_v42 }
 0x155   : > { %v646_v44 = vrot.slane %v645_v43, 1  ;;  %1488 = vmatmul.mubr.msk.bf16.vlgmr.msra.gmra.mrb[0].mxu1 %vm487_vm0, %v2145_v26 }
 0x156   : > { %1503 = vmatprep.mubr.msk.bf16.mxu1 %vm487_vm0, %v2101_v7 }
 0x157   : > { %vm647_vm14 = vcmp.lt.s32.totalorder %v645_v43, %v646_v44 }
 0x158   : > { %v648_v45 = vsel %vm647_vm14, %v645_v43, %v646_v44 }
 0x159   : > { %vm651_vm2 = vcmp.eq.s32.totalorder %v567_v32, %v648_v45  ;;  %vm652_vm3 = vcmp.eq.s32.totalorder %v568_v33, %v648_v45  ;;  %vm653_vm4 = vcmp.eq.s32.totalorder %v569_v34, %v648_v45  ;;  %vm654_vm5 = vcmp.eq.s32.totalorder %v570_v35, %v648_v45 }
 0x15a   : > { %v655_v46 = vsel %vm651_vm2, 32, %v567_v32  ;;  %v656_v47 = vsel %vm652_vm3, 32, %v568_v33  ;;  %v657_v48 = vsel %vm653_vm4, 32, %v569_v34  ;;  %v658_v49 = vsel %vm654_vm5, 32, %v570_v35 }
 0x15b   : > { %vm722_vm6 = vcmp.lt.s32.totalorder %v655_v46, %v656_v47  ;;  %vm724_vm7 = vcmp.lt.s32.totalorder %v657_v48, %v658_v49  ;;  %vm649_vm8 = vcmp.lt.s32.totalorder %v648_v45, 32  ;;  %vm442_vm4 = vcmask 1042432  }
 0x15c   : > { %v723_v50 = vsel %vm722_vm6, %v655_v46, %v656_v47  ;;  %v725_v51 = vsel %vm724_vm7, %v657_v48, %v658_v49  ;;  %v650_v53 = vsel %vm649_vm8, %v648_v45, %v2131_v15 }
 0x15d   : > { %vm726_vm9 = vcmp.lt.s32.totalorder %v723_v50, %v725_v51  ;;  %vm659_vm10 = vcmp.eq.s32.totalorder %v2107_v11, %v650_v53  ;;  %vm660_vm11 = vcmp.eq.s32.totalorder %v2119_v55, %v650_v53  ;;  %v1157_v54 = vsel %vm1156_vm1, %v1155_v52, %v650_v53 }
 0x15e   : > { %v727_v56 = vsel %vm726_vm9, %v723_v50, %v725_v51  ;;  %vm1392_vm12 = vmpackc.low %vm660_vm11, %vm659_vm10  ;;  %vm661_vm13 = vcmp.eq.s32.totalorder %v2124_v63, %v650_v53  ;;  %vm662_vm14 = vcmp.eq.s32.totalorder %v2127_v0, %v650_v53 }
 0x15f   : > { %v728_v57 = vrot.slane %v727_v56, 4  ;;  %1491 = vmatprep.subr.msk.bf16.mxu0 %vm1392_vm12, %v1857_v23  ;;  %vm1394_vm15 = vmpackc.low %vm662_vm14, %vm661_vm13 }
 0x160   : > { %1492 = vmatpush3.bf16.msk.msra.mxu0 %vm1392_vm12, %v1857_v23 }
 0x161   : > { %vm729_vm2 = vcmp.lt.s32.totalorder %v727_v56, %v728_v57  ;;  %1493 = vmatprep.subr.msk.bf16.mxu0 %vm1394_vm15, %v1857_v23 }
 0x162   : > { %v730_v58 = vsel %vm729_vm2, %v727_v56, %v728_v57 }
 0x163   : > { %v731_v59 = vrot.slane %v730_v58, 2 }
 0x164   : > { %1494 = vmatpush3.bf16.msk.msra.mxu0 %vm1394_vm15, %v1857_v23 }
 0x165   : > { %vm732_vm1 = vcmp.lt.s32.totalorder %v730_v58, %v731_v59 }
 0x166   : > { %v733_v60 = vsel %vm732_vm1, %v730_v58, %v731_v59 }
 0x167   : > { %v734_v61 = vrot.slane %v733_v60, 1  ;;  %1496 = vmatmul.mubr.msk.bf16.vlgmr.msra.gmra.mrb[4].mxu0 %vm487_vm0, %v2145_v26 }
 0x168   : > { %1511 = vmatprep.mubr.msk.bf16.mxu0 %vm487_vm0, %v2101_v7 }
 0x169   : > { %vm735_vm3 = vcmp.lt.s32.totalorder %v733_v60, %v734_v61 }
 0x16a   : > { %v736_v62 = vsel %vm735_vm3, %v733_v60, %v734_v61 }
 0x16b   : > { %vm737_vm5 = vcmp.lt.s32.totalorder %v736_v62, 32  ;;  %vm739_vm6 = vcmp.eq.s32.totalorder %v655_v46, %v736_v62  ;;  %vm740_vm7 = vcmp.eq.s32.totalorder %v656_v47, %v736_v62  ;;  %vm741_vm8 = vcmp.eq.s32.totalorder %v657_v48, %v736_v62 }
 0x16c   : > { %v738_v1 = vsel %vm737_vm5, %v736_v62, %v2131_v15  ;;  %vm742_vm9 = vcmp.eq.s32.totalorder %v658_v49, %v736_v62  ;;  %v743_v2 = vsel %vm739_vm6, 32, %v655_v46  ;;  %v744_v3 = vsel %vm740_vm7, 32, %v656_v47 }
 0x16d   : > { %v745_v4 = vsel %vm741_vm8, 32, %v657_v48  ;;  %v746_v5 = vsel %vm742_vm9, 32, %v658_v49  ;;  %vm747_vm10 = vcmp.eq.s32.totalorder %v2107_v11, %v738_v1  ;;  %vm748_vm11 = vcmp.eq.s32.totalorder %v2119_v55, %v738_v1 }
 0x16e   : > { %vm1399_vm12 = vmpackc.low %vm748_vm11, %vm747_vm10  ;;  %vm749_vm13 = vcmp.eq.s32.totalorder %v2124_v63, %v738_v1  ;;  %vm750_vm14 = vcmp.eq.s32.totalorder %v2127_v0, %v738_v1  ;;  %vm810_vm15 = vcmp.lt.s32.totalorder %v743_v2, %v744_v3  ;;  %vm812_vm2 = vcmp.lt.s32.totalorder %v745_v4, %v746_v5 }
 0x16f   : > { %1499 = vmatprep.subr.msk.bf16.mxu1 %vm1399_vm12, %v1857_v23  ;;  %v811_v6 = vsel %vm810_vm15, %v743_v2, %v744_v3  ;;  %v813_v8 = vsel %vm812_vm2, %v745_v4, %v746_v5  ;;  %v2187_v9 = vsel %vm442_vm4, %v1157_v54, %v738_v1  ;;  %vm1401_vm1 = vmpackc.low %vm750_vm14, %vm749_vm13 }
 0x170   : > { %1500 = vmatpush3.bf16.msk.msra.mxu1 %vm1399_vm12, %v1857_v23  ;;  %vm814_vm3 = vcmp.lt.s32.totalorder %v811_v6, %v813_v8 }
 0x171   : > { %1501 = vmatprep.subr.msk.bf16.mxu1 %vm1401_vm1, %v1857_v23  ;;  %v815_v10 = vsel %vm814_vm3, %v811_v6, %v813_v8  ;;  %v2263_v8 = vsel %vm442_vm4, %v2112_v16, 0.0 }
 0x172   : > { %v816_v12 = vrot.slane %v815_v10, 4 }
 0x174   : > { %1502 = vmatpush3.bf16.msk.msra.mxu1 %vm1401_vm1, %v1857_v23  ;;  %vm817_vm5 = vcmp.lt.s32.totalorder %v815_v10, %v816_v12 }
 0x175   : > { %v818_v13 = vsel %vm817_vm5, %v815_v10, %v816_v12 }
 0x176   : > { %v819_v14 = vrot.slane %v818_v13, 2 }
 0x177   : > { %1504 = vmatmul.mubr.msk.bf16.vlgmr.msra.gmra.mrb[4].mxu1 %vm487_vm0, %v2145_v26 }
 0x178   : > { %vm820_vm6 = vcmp.lt.s32.totalorder %v818_v13, %v819_v14  ;;  %1519 = vmatprep.mubr.msk.bf16.mxu1 %vm487_vm0, %v2101_v7 }
 0x179   : > { %v821_v17 = vsel %vm820_vm6, %v818_v13, %v819_v14 }
 0x17a   : > { %v822_v18 = vrot.slane %v821_v17, 1 }
 0x17c   : > { %vm823_vm7 = vcmp.lt.s32.totalorder %v821_v17, %v822_v18 }
 0x17d   : > { %v824_v19 = vsel %vm823_vm7, %v821_v17, %v822_v18 }
 0x17e   : > { %vm825_vm8 = vcmp.lt.s32.totalorder %v824_v19, 32  ;;  %vm827_vm9 = vcmp.eq.s32.totalorder %v743_v2, %v824_v19  ;;  %vm828_vm10 = vcmp.eq.s32.totalorder %v744_v3, %v824_v19  ;;  %vm829_vm11 = vcmp.eq.s32.totalorder %v745_v4, %v824_v19 }
 0x17f   : > { %v2197_v20 = vsel %vm825_vm8, %v824_v19, %v2131_v15  ;;  %vm830_vm12 = vcmp.eq.s32.totalorder %v746_v5, %v824_v19  ;;  %v831_v21 = vsel %vm827_vm9, 32, %v743_v2  ;;  %v832_v22 = vsel %vm828_vm10, 32, %v744_v3 }
 0x180   : > { %v833_v24 = vsel %vm829_vm11, 32, %v745_v4  ;;  %v834_v25 = vsel %vm830_vm12, 32, %v746_v5  ;;  %vm835_vm13 = vcmp.eq.s32.totalorder %v2107_v11, %v2197_v20  ;;  %vm836_vm14 = vcmp.eq.s32.totalorder %v2119_v55, %v2197_v20 }
 0x181   : > { %vm1406_vm15 = vmpackc.low %vm836_vm14, %vm835_vm13  ;;  %vm837_vm2 = vcmp.eq.s32.totalorder %v2124_v63, %v2197_v20  ;;  %vm838_vm1 = vcmp.eq.s32.totalorder %v2127_v0, %v2197_v20  ;;  %vm898_vm3 = vcmp.lt.s32.totalorder %v831_v21, %v832_v22  ;;  %vm900_vm5 = vcmp.lt.s32.totalorder %v833_v24, %v834_v25 }
 0x182   : > { %1507 = vmatprep.subr.msk.bf16.mxu0 %vm1406_vm15, %v1857_v23  ;;  %v899_v27 = vsel %vm898_vm3, %v831_v21, %v832_v22  ;;  %v901_v28 = vsel %vm900_vm5, %v833_v24, %v834_v25  ;;  %vm1408_vm6 = vmpackc.low %vm838_vm1, %vm837_vm2 }
 0x183   : > { %1508 = vmatpush3.bf16.msk.msra.mxu0 %vm1406_vm15, %v1857_v23  ;;  %vm902_vm7 = vcmp.lt.s32.totalorder %v899_v27, %v901_v28 }
 0x184   : > { %1509 = vmatprep.subr.msk.bf16.mxu0 %vm1408_vm6, %v1857_v23  ;;  %v903_v29 = vsel %vm902_vm7, %v899_v27, %v901_v28 }
 0x185   : > { %v904_v30 = vrot.slane %v903_v29, 4 }
 0x187   : > { %1510 = vmatpush3.bf16.msk.msra.mxu0 %vm1408_vm6, %v1857_v23  ;;  %vm905_vm8 = vcmp.lt.s32.totalorder %v903_v29, %v904_v30 }
 0x188   : > { %v906_v31 = vsel %vm905_vm8, %v903_v29, %v904_v30 }
 0x189   : > { %v907_v32 = vrot.slane %v906_v31, 2 }
 0x18a   : > { %1512 = vmatmul.mubr.msk.bf16.vlgmr.msra.gmra.mrb[8].mxu0 %vm487_vm0, %v2145_v26 }
 0x18b   : > { %vm908_vm9 = vcmp.lt.s32.totalorder %v906_v31, %v907_v32  ;;  %1527 = vmatprep.mubr.msk.bf16.mxu0 %vm487_vm0, %v2101_v7 }
 0x18c   : > { %v909_v33 = vsel %vm908_vm9, %v906_v31, %v907_v32 }
 0x18d   : > { %v910_v34 = vrot.slane %v909_v33, 1 }
 0x18f   : > { %vm911_vm10 = vcmp.lt.s32.totalorder %v909_v33, %v910_v34 }
 0x190   : > { %v912_v35 = vsel %vm911_vm10, %v909_v33, %v910_v34 }
 0x191   : > { %vm913_vm11 = vcmp.lt.s32.totalorder %v912_v35, 32  ;;  %vm915_vm12 = vcmp.eq.s32.totalorder %v831_v21, %v912_v35  ;;  %vm916_vm13 = vcmp.eq.s32.totalorder %v832_v22, %v912_v35  ;;  %vm917_vm14 = vcmp.eq.s32.totalorder %v833_v24, %v912_v35 }
 0x192   : > { %v2216_v36 = vsel %vm913_vm11, %v912_v35, %v2131_v15  ;;  %vm918_vm15 = vcmp.eq.s32.totalorder %v834_v25, %v912_v35  ;;  %v919_v37 = vsel %vm915_vm12, 32, %v831_v21  ;;  %v920_v38 = vsel %vm916_vm13, 32, %v832_v22 }
 0x193   : > { %v921_v39 = vsel %vm917_vm14, 32, %v833_v24  ;;  %v922_v40 = vsel %vm918_vm15, 32, %v834_v25  ;;  %vm923_vm2 = vcmp.eq.s32.totalorder %v2107_v11, %v2216_v36  ;;  %vm924_vm1 = vcmp.eq.s32.totalorder %v2119_v55, %v2216_v36 }
 0x194   : > { %vm1413_vm3 = vmpackc.low %vm924_vm1, %vm923_vm2  ;;  %vm925_vm5 = vcmp.eq.s32.totalorder %v2124_v63, %v2216_v36  ;;  %vm926_vm6 = vcmp.eq.s32.totalorder %v2127_v0, %v2216_v36  ;;  %vm986_vm7 = vcmp.lt.s32.totalorder %v919_v37, %v920_v38  ;;  %vm988_vm8 = vcmp.lt.s32.totalorder %v921_v39, %v922_v40 }
 0x195   : > { %1515 = vmatprep.subr.msk.bf16.mxu1 %vm1413_vm3, %v1857_v23  ;;  %v987_v41 = vsel %vm986_vm7, %v919_v37, %v920_v38  ;;  %v989_v42 = vsel %vm988_vm8, %v921_v39, %v922_v40  ;;  %vm1415_vm9 = vmpackc.low %vm926_vm6, %vm925_vm5 }
 0x196   : > { %1516 = vmatpush3.bf16.msk.msra.mxu1 %vm1413_vm3, %v1857_v23  ;;  %vm990_vm10 = vcmp.lt.s32.totalorder %v987_v41, %v989_v42 }
 0x197   : > { %1517 = vmatprep.subr.msk.bf16.mxu1 %vm1415_vm9, %v1857_v23  ;;  %v991_v43 = vsel %vm990_vm10, %v987_v41, %v989_v42 }
 0x198   : > { %v992_v44 = vrot.slane %v991_v43, 4 }
 0x19a   : > { %1518 = vmatpush3.bf16.msk.msra.mxu1 %vm1415_vm9, %v1857_v23  ;;  %vm993_vm11 = vcmp.lt.s32.totalorder %v991_v43, %v992_v44 }
 0x19b   : > { %v994_v45 = vsel %vm993_vm11, %v991_v43, %v992_v44 }
 0x19c   : > { %v995_v46 = vrot.slane %v994_v45, 2 }
 0x19d   : > { %1520 = vmatmul.mubr.msk.bf16.vlgmr.msra.gmra.mrb[8].mxu1 %vm487_vm0, %v2145_v26 }
 0x19e   : > { %vm996_vm12 = vcmp.lt.s32.totalorder %v994_v45, %v995_v46  ;;  %1535 = vmatprep.mubr.msk.bf16.mxu1 %vm487_vm0, %v2101_v7 }
 0x19f   : > { %v997_v47 = vsel %vm996_vm12, %v994_v45, %v995_v46 }
 0x1a0   : > { %v998_v48 = vrot.slane %v997_v47, 1 }
 0x1a2   : > { %vm999_vm13 = vcmp.lt.s32.totalorder %v997_v47, %v998_v48 }
 0x1a3   : > { %v1000_v49 = vsel %vm999_vm13, %v997_v47, %v998_v48 }
 0x1a4   : > { %vm1001_vm14 = vcmp.lt.s32.totalorder %v1000_v49, 32  ;;  %vm1003_vm15 = vcmp.eq.s32.totalorder %v919_v37, %v1000_v49  ;;  %vm1004_vm2 = vcmp.eq.s32.totalorder %v920_v38, %v1000_v49  ;;  %vm1005_vm1 = vcmp.eq.s32.totalorder %v921_v39, %v1000_v49 }
 0x1a5   : > { %v1002_v50 = vsel %vm1001_vm14, %v1000_v49, %v2131_v15  ;;  %vm1006_vm3 = vcmp.eq.s32.totalorder %v922_v40, %v1000_v49  ;;  %v1007_v51 = vsel %vm1003_vm15, 32, %v919_v37  ;;  %v1008_v52 = vsel %vm1004_vm2, 32, %v920_v38 }
 0x1a6   : > { %vm1011_vm5 = vcmp.eq.s32.totalorder %v2107_v11, %v1002_v50  ;;  %vm1012_vm6 = vcmp.eq.s32.totalorder %v2119_v55, %v1002_v50  ;;  %vm1013_vm7 = vcmp.eq.s32.totalorder %v2124_v63, %v1002_v50  ;;  %vm1014_vm8 = vcmp.eq.s32.totalorder %v2127_v0, %v1002_v50 }
 0x1a7   : > { %vm1420_vm9 = vmpackc.low %vm1012_vm6, %vm1011_vm5  ;;  %v1009_v7 = vsel %vm1005_vm1, 32, %v921_v39  ;;  %v1010_v53 = vsel %vm1006_vm3, 32, %v922_v40  ;;  %vm1074_vm10 = vcmp.lt.s32.totalorder %v1007_v51, %v1008_v52  ;;  %vm1159_vm2 = vcmask 1043456  }
 0x1a8   : > { %1523 = vmatprep.subr.msk.bf16.mxu0 %vm1420_vm9, %v1857_v23  ;;  %v1075_v54 = vsel %vm1074_vm10, %v1007_v51, %v1008_v52  ;;  %vm1076_vm11 = vcmp.lt.s32.totalorder %v1009_v7, %v1010_v53  ;;  %vm1422_vm12 = vmpackc.low %vm1014_vm8, %vm1013_vm7  ;;  %vm1161_vm1 = vcmask 1044480   ;;  %vm1163_vm5 = vcmask 1045504  }
 0x1a9   : > { %1524 = vmatpush3.bf16.msk.msra.mxu0 %vm1420_vm9, %v1857_v23  ;;  %v1077_v56 = vsel %vm1076_vm11, %v1009_v7, %v1010_v53  ;;  %v1160_v2 = vsel %vm1159_vm2, %v2187_v9, %v2197_v20  ;;  %vm1165_vm7 = vcmask 1046528  }
 0x1aa   : > { %1525 = vmatprep.subr.msk.bf16.mxu0 %vm1422_vm12, %v1857_v23  ;;  %vm1078_vm13 = vcmp.lt.s32.totalorder %v1075_v54, %v1077_v56  ;;  %v1162_v3 = vsel %vm1161_vm1, %v1160_v2, %v2216_v36 }
 0x1ab   : > { %v1079_v57 = vsel %vm1078_vm13, %v1075_v54, %v1077_v56  ;;  %v1164_v5 = vsel %vm1163_vm5, %v1162_v3, %v1002_v50 }
 0x1ac   : > { %v1080_v58 = vrot.slane %v1079_v57, 4 }
 0x1ad   : > { %1526 = vmatpush3.bf16.msk.msra.mxu0 %vm1422_vm12, %v1857_v23 }
 0x1ae   : > { %vm1081_vm14 = vcmp.lt.s32.totalorder %v1079_v57, %v1080_v58 }
 0x1af   : > { %v1082_v59 = vsel %vm1081_vm14, %v1079_v57, %v1080_v58 }
 0x1b0   : > { %v1083_v60 = vrot.slane %v1082_v59, 2  ;;  %1528 = vmatmul.mubr.msk.bf16.vlgmr.msra.gmra.mrb[12].mxu0 %vm487_vm0, %v2145_v26 }
 0x1b2   : > { %vm1084_vm15 = vcmp.lt.s32.totalorder %v1082_v59, %v1083_v60 }
 0x1b3   : > { %v1085_v61 = vsel %vm1084_vm15, %v1082_v59, %v1083_v60 }
 0x1b4   : > { %v1086_v62 = vrot.slane %v1085_v61, 1 }
 0x1b6   : > { %vm1087_vm3 = vcmp.lt.s32.totalorder %v1085_v61, %v1086_v62 }
 0x1b7   : > { %v1088_v1 = vsel %vm1087_vm3, %v1085_v61, %v1086_v62 }
 0x1b8   : > { %vm1089_vm6 = vcmp.lt.s32.totalorder %v1088_v1, 32 }
 0x1b9   : > { %v1090_v4 = vsel %vm1089_vm6, %v1088_v1, %v2131_v15 }
 0x1ba   : > { %vm1091_vm8 = vcmp.eq.s32.totalorder %v2107_v11, %v1090_v4  ;;  %vm1092_vm9 = vcmp.eq.s32.totalorder %v2119_v55, %v1090_v4  ;;  %vm1093_vm10 = vcmp.eq.s32.totalorder %v2124_v63, %v1090_v4  ;;  %vm1094_vm11 = vcmp.eq.s32.totalorder %v2127_v0, %v1090_v4 }
 0x1bb   : > { %vm1427_vm12 = vmpackc.low %vm1092_vm9, %vm1091_vm8  ;;  %v1166_v6 = vsel %vm1165_vm7, %v1164_v5, %v1090_v4 }
 0x1bc   : > { %1531 = vmatprep.subr.msk.bf16.mxu1 %vm1427_vm12, %v1857_v23  ;;  %1167 = vst [vmem:[%s319_s7] sm:$0xff] %v1166_v6  ;;  %vm1429_vm13 = vmpackc.low %vm1094_vm11, %vm1093_vm10 }
 0x1bd   : > { %1532 = vmatpush3.bf16.msk.msra.mxu1 %vm1427_vm12, %v1857_v23 }
 0x1be   : > { %1533 = vmatprep.subr.msk.bf16.mxu1 %vm1429_vm13, %v1857_v23 }
 0x1c1   : > { %1534 = vmatpush3.bf16.msk.msra.mxu1 %vm1429_vm13, %v1857_v23 }
 0x1c4   : > { %1536 = vmatmul.mubr.msk.bf16.vlgmr.msra.gmra.mrb[12].mxu1 %vm487_vm0, %v2145_v26 }
 0x214   : > { %v1481_v11 = vpop.f32.mrb[0].mxu0 }
 0x215   : > { %v528_v55 = vpop.f32.mrb[1].mxu0 }
 0x216   : > { %v1482_v63 = vpop.f32.mrb[2].mxu0 }
 0x217   : > { %v531_v0 = vpop.f32.mrb[3].mxu0 }
 0x218   : > { %v542_v15 = vadd.f32 %v531_v0, %v528_v55 }
 0x21a   : > { %v543_v9 = vadd.f32 %v1481_v11, %v542_v15 }
 0x21c   : > { %v544_v10 = vsub.f32 %v543_v9, %v2263_v8 }
 0x21e   : > { %545 = vst [vmem:[%s2266_s14] sm:$0xff] %v544_v10 }
 0x21f   : > { %1740 = shalt.err (!%p1737_p13)
}
 0x220   : > { %s1741_s8 = scalar_lea.hbm %s2273_s29, 128  ;;  %s1745_s21 = scalar_lea.hbm %s2367_s4, 256 }
 0x221   : > { %p1742_p5 = scmp.ne.s32.totalorder %s2273_s29, %s1741_s8  ;;  %p1746_p6 = scmp.lt.u32.totalorder %s2273_s29, %s2367_s4 }
 0x222   : > { %p1747_p3 = scmp.lt.u32.totalorder %s1745_s21, %s1741_s8  ;;  %p1749_p0 = scmp.lt.u32.totalorder %s1741_s8, %s2273_s29 }
 0x223   : > { %p1743_p11 = pnand %p1742_p5, %p2388_p7 }
 0x224   : > { %p1748_p2 = por %p1747_p3, %p1746_p6 }
 0x225   : > { %p1744_p4 = pneg %p1743_p11 }
 0x226   : > { %p1750_p12 = por %p1749_p0, %p1748_p2 }
 0x228   : > { %p1751_p1 = pnand %p1750_p12, %p1744_p4 }
 0x22a   : > { %1754 = shalt.err (!%p1751_p1)
}
 0x22b   : > { %1549 = dma.vmem_to_hbm [thread:$0]  (%p2388_p7), %s1206_s13, 128, %s2273_s29, %s1174_s10   ;;  %v1489_v16 = vpop.f32.mrb[0].mxu1 }
 0x22c   : > { %v615_v23 = vpop.f32.mrb[1].mxu1  ;;  %s1442_s7 = sshll.u32 %s1837_s18, 10  ;;  %s1188_s12 = sshll.u32 %s2266_s14, 4  ;;  %s2312_s12 = int_to_ptr.vmem [resolvable:$true] %s1188_s12 }
 0x22d   : > { %v1490_v26 = vpop.f32.mrb[2].mxu1  ;;  %s2310_s9 = scalar_lea.hbm %s2366_s3, %s1442_s7  ;;  %s1169_s1 = scalar_lea.sflag [#allocation4], %s2081_s26 }
 0x22e   : > { %v618_v12 = vpop.f32.mrb[3].mxu1  ;;  %s1755_s29 = scalar_lea.vmem %s2312_s12, 1024  ;;  %s1859_s18 = smov [#allocation8]  }
 0x22f   : > { %v629_v13 = vadd.f32 %v618_v12, %v615_v23  ;;  %p1756_p8 = scmp.ne.s32.totalorder %s2312_s12, %s1755_s29  ;;  %s1759_s10 = sshll.u32 %s1859_s18, 4  ;;  %s1760_s10 = int_to_ptr.vmem [resolvable:$false] %s1759_s10 }
 0x230   : > { %s1761_s11 = scalar_lea.vmem %s1760_s10, 2048  ;;  %p1762_p13 = scmp.lt.s32.totalorder %s2312_s12, %s1760_s10 }
 0x231   : > { %v630_v14 = vadd.f32 %v1489_v16, %v629_v13  ;;  %p1757_p9 = pnand %p1756_p8, %p2388_p7  ;;  %p1763_p5 = scmp.lt.s32.totalorder %s1761_s11, %s1755_s29 }
 0x233   : > { %v631_v17 = vsub.f32 %v630_v14, %v2263_v8  ;;  %p1758_p10 = pneg %p1757_p9  ;;  %p1764_p11 = por %p1763_p5, %p1762_p13 }
 0x235   : > { %1391 = vst [vmem:[%s2266_s14 + $0x8] sm:$0xff] %v631_v17  ;;  %p1765_p4 = pnand %p1764_p11, %p1758_p10 }
 0x23a   : > { %v1497_v18 = vpop.f32.mrb[4].mxu0 }
 0x23b   : > { %v703_v19 = vpop.f32.mrb[5].mxu0 }
 0x23c   : > { %v1498_v20 = vpop.f32.mrb[6].mxu0 }
 0x23d   : > { %v706_v21 = vpop.f32.mrb[7].mxu0 }
 0x23e   : > { %v717_v22 = vadd.f32 %v706_v21, %v703_v19 }
 0x240   : > { %v718_v24 = vadd.f32 %v1497_v18, %v717_v22 }
 0x242   : > { %v719_v25 = vsub.f32 %v718_v24, %v2263_v8 }
 0x244   : > { %1398 = vst [vmem:[%s2266_s14 + $0x10] sm:$0xff] %v719_v25 }
 0x24a   : > { %v1505_v27 = vpop.f32.mrb[4].mxu1 }
 0x24b   : > { %v791_v28 = vpop.f32.mrb[5].mxu1 }
 0x24c   : > { %v1506_v29 = vpop.f32.mrb[6].mxu1 }
 0x24d   : > { %v794_v30 = vpop.f32.mrb[7].mxu1 }
 0x24e   : > { %v805_v31 = vadd.f32 %v794_v30, %v791_v28 }
 0x250   : > { %v806_v32 = vadd.f32 %v1505_v27, %v805_v31 }
 0x252   : > { %v807_v33 = vsub.f32 %v806_v32, %v2263_v8 }
 0x254   : > { %1405 = vst [vmem:[%s2266_s14 + $0x18] sm:$0xff] %v807_v33 }
 0x25d   : > { %v1513_v34 = vpop.f32.mrb[8].mxu0 }
 0x25e   : > { %v879_v35 = vpop.f32.mrb[9].mxu0 }
 0x25f   : > { %v1514_v36 = vpop.f32.mrb[10].mxu0 }
 0x260   : > { %v882_v37 = vpop.f32.mrb[11].mxu0 }
 0x261   : > { %v893_v38 = vadd.f32 %v882_v37, %v879_v35 }
 0x263   : > { %v894_v39 = vadd.f32 %v1513_v34, %v893_v38 }
 0x265   : > { %v895_v40 = vsub.f32 %v894_v39, %v2263_v8 }
 0x267   : > { %1412 = vst [vmem:[%s2266_s14 + $0x20] sm:$0xff] %v895_v40 }
 0x270   : > { %v1521_v41 = vpop.f32.mrb[8].mxu1 }
 0x271   : > { %v967_v42 = vpop.f32.mrb[9].mxu1 }
 0x272   : > { %v1522_v43 = vpop.f32.mrb[10].mxu1 }
 0x273   : > { %v970_v44 = vpop.f32.mrb[11].mxu1 }
 0x274   : > { %v981_v45 = vadd.f32 %v970_v44, %v967_v42 }
 0x276   : > { %v982_v46 = vadd.f32 %v1521_v41, %v981_v45 }
 0x278   : > { %v983_v47 = vsub.f32 %v982_v46, %v2263_v8 }
 0x27a   : > { %1419 = vst [vmem:[%s2266_s14 + $0x28] sm:$0xff] %v983_v47 }
 0x283   : > { %v1529_v48 = vpop.f32.mrb[12].mxu0 }
 0x284   : > { %v1055_v49 = vpop.f32.mrb[13].mxu0 }
 0x285   : > { %v1530_v50 = vpop.f32.mrb[14].mxu0 }
 0x286   : > { %v1058_v51 = vpop.f32.mrb[15].mxu0 }
 0x287   : > { %v1069_v52 = vadd.f32 %v1058_v51, %v1055_v49 }
 0x289   : > { %v1070_v7 = vadd.f32 %v1529_v48, %v1069_v52 }
 0x28b   : > { %v1071_v53 = vsub.f32 %v1070_v7, %v2263_v8 }
 0x28d   : > { %1426 = vst [vmem:[%s2266_s14 + $0x30] sm:$0xff] %v1071_v53 }
 0x297   : > { %v1537_v54 = vpop.f32.mrb[12].mxu1 }
 0x298   : > { %v1135_v56 = vpop.f32.mrb[13].mxu1 }
 0x299   : > { %v1538_v57 = vpop.f32.mrb[14].mxu1 }
 0x29a   : > { %v1138_v58 = vpop.f32.mrb[15].mxu1 }
 0x29b   : > { %v1149_v59 = vadd.f32 %v1138_v58, %v1135_v56 }
 0x29d   : > { %v1150_v60 = vadd.f32 %v1537_v54, %v1149_v59 }
 0x29f   : > { %v1151_v61 = vsub.f32 %v1150_v60, %v2263_v8 }
 0x2a1   : > { %1433 = vst [vmem:[%s2266_s14 + $0x38] sm:$0xff] %v1151_v61 }
 0x2a2   : > { %1768 = shalt.err (!%p1765_p4)
}
 0x2a3   : > { %s1769_s14 = scalar_lea.hbm %s2310_s9, 1024  ;;  %s1773_s0 = scalar_lea.hbm %s2366_s3, 2048 }
 0x2a4   : > { %p1770_p6 = scmp.ne.s32.totalorder %s2310_s9, %s1769_s14  ;;  %p1774_p0 = scmp.lt.u32.totalorder %s2310_s9, %s2366_s3 }
 0x2a5   : > { %p1775_p12 = scmp.lt.u32.totalorder %s1773_s0, %s1769_s14  ;;  %p1777_p8 = scmp.lt.u32.totalorder %s1769_s14, %s2310_s9 }
 0x2a6   : > { %p1771_p3 = pnand %p1770_p6, %p2388_p7 }
 0x2a7   : > { %p1776_p1 = por %p1775_p12, %p1774_p0 }
 0x2a8   : > { %p1772_p2 = pneg %p1771_p3 }
 0x2a9   : > { %p1778_p9 = por %p1777_p8, %p1776_p1 }
 0x2ab   : > { %p1779_p10 = pnand %p1778_p9, %p1772_p2 }
 0x2ad   : > { %1782 = shalt.err (!%p1779_p10)
}
 0x2ae   : > { %s1860_s25 = smov 128   ;;  %s1861_s21 = smov 8  }
 0x2af   : > { %1548 = dma.vmem_to_hbm [thread:$0]  (%p2388_p7), %s2312_s12, 1024, %s2310_s9, %s1169_s1, %s1860_s25, %s1860_s25, %s1861_s21  }
 0x2b0 PF: > { %s1217_s27 = sand.u32 1, %s1825_s15   ;;  %p2389_p13 = scmp.ne.s32.totalorder %s2378_s30, 0 }
 0x2b1   : > { %p2390_p5 = scmp.ge.s32.totalorder %s1845_s20, 2  ;;  %s1218_s23 = scalar_lea.sflag [#allocation4], %s1217_s27 }
 0x2b3   : > { %p1563_p11 = pnand %p2390_p5, %p2389_p13 }
 0x2b5   : > { %1816 = dma.done.wait (!%p1563_p11), %s1218_s23, 1024  }
 0x2b6   : > { %1818 = vsyncadd (!%p1563_p11), %s1218_s23, 4294966272  ;;  %s1227_s7 = scalar_lea.sflag [#allocation10], %s1217_s27 }
 0x2b7   : > { %1820 = dma.done.wait (!%p1563_p11), %s1227_s7, 128  }
 0x2b8   : > { %1822 = vsyncadd (!%p1563_p11), %s1227_s7, 4294967168  ;;  %s27_s20 = sadd.s32 1, %s1845_s20   ;;  %s2391_s28 = sld [smem:[#allocation16_spill]] }
 0x2b9   : > { %p24_p4 = scmp.ge.s32.totalorder %s27_s20, 4   ;;  %s2392_s26 = sld [smem:[#allocation15_spill]] }
 0x2ba   : > { %s2393_s15 = smov %s1829_s16  ;;  %s2394_s16 = smov %s1833_s17 }
 0x2bb   : > { %s2396_s18 = smov %s1841_s19  ;;  %26 = sbr.rel (!%p24_p4) target bundleno = 13 (0xd), region = 125 }
 0x2be   : > { %s2395_s17 = smov %s2391_s28 }
 0x2bf   : > { %s2397_s19 = smov %s2392_s26 }
 0x2c2   :  { %1232 = vsyncpa [#allocation3], 1 }
 0x2c3   :  { %1234 = vsyncpa [#allocation3 + $0x1], 1 }
 0x2c4   :  { %1235 = vsyncpa [#allocation6], 1 }
 0x2c5   :  { %1237 = vsyncpa [#allocation6 + $0x1], 1 }
 0x2c6   :  { %1238 = vsyncpa [#allocation4], 1 }
 0x2c7   :  { %1240 = vsyncpa [#allocation4 + $0x1], 1 }
 0x2c8   :  { %1241 = vsyncpa [#allocation10], 1 }
 0x2c9   :  { %1243 = vsyncpa [#allocation10 + $0x1], 1 }

</bundles_post_ra>
